<compile_context>
chip_gen: v7x
topology: tpu7x:2x2x1
jax: 0.10.0
libtpu: 0.0.40
codegen_flags: <defaults>
</compile_context>

<pallas_src>
import functools

import jax
import jax.numpy as jnp
import numpy as np
from jax.experimental import pallas as pl
from jax.experimental.pallas import tpu as pltpu


# ------------------------------ Pallas kernel -------------------------------

def _fused_forward_kernel(x_ref, w1_ref, b1_ref, w2_ref, b2_ref, w3_ref, b3_ref,
                          o_ref, *, pool_chunk):
    """Whole MinigridEnvModel forward for one batch tile, VMEM-resident.

    x_ref : (TB, Kin_pad)   flattened HWC observations (lane-padded with zeros)
    w1/b1 : conv1(+bias) expanded onto the flat input; produces the 4 maxpool
            taps as 4 consecutive lane chunks of width `pool_chunk` (128-mult)
    w2/b2 : conv2(+bias) acting on the flat pooled map
    w3/b3 : conv3(+bias) acting on the flat conv2 map, columns pre-ordered to
            PyTorch's (C,H,W) flatten
    o_ref : (TB, 64*H3*W3)  final embedding (lane-dense store)
    """
    x = x_ref[...]

    # conv1 + bias + ReLU for all 4 pooling taps at once.
    h1 = jnp.dot(x, w1_ref[...], preferred_element_type=jnp.float32) + b1_ref[...]
    h1 = jnp.maximum(h1, 0.0)

    # 2x2 max-pool == elementwise max of the 4 tap chunks (VPU only,
    # vreg-aligned static lane slices).
    p = jnp.maximum(
        jnp.maximum(h1[:, 0 * pool_chunk:1 * pool_chunk],
                    h1[:, 1 * pool_chunk:2 * pool_chunk]),
        jnp.maximum(h1[:, 2 * pool_chunk:3 * pool_chunk],
                    h1[:, 3 * pool_chunk:4 * pool_chunk]))

    # conv2 + bias + ReLU.
    h2 = jnp.dot(p, w2_ref[...], preferred_element_type=jnp.float32) + b2_ref[...]
    h2 = jnp.maximum(h2, 0.0)

    # conv3 + bias + ReLU, already in CHW flatten order -> lane-dense store.
    h3 = jnp.dot(h2, w3_ref[...], preferred_element_type=jnp.float32) + b3_ref[...]
    o_ref[...] = jnp.maximum(h3, 0.0)


# ------------------------------ wrapper / call -------------------------------

def minigrid_env_model_forward(obs_hwc, packed):
    """obs_hwc: (N, H, W, C) float32; packed: output of pack_params()."""
    n = obs_hwc.shape[0]
    x = obs_hwc.reshape(n, -1).astype(jnp.float32)      # (N, H*W*C), free reshape
    k_in = x.shape[1]
    w1, b1 = packed["W1"], packed["B1"]
    w2, b2 = packed["W2"], packed["B2"]
    w3, b3 = packed["W3"], packed["B3"]
    k_in_pad = w1.shape[0]
    l1, l3 = w1.shape[1], w3.shape[1]
    pool_chunk = l1 // 4

    # Batch tiling: single full block (sublane-padded) when small; 128-row
    # tiles when large, sharded across TensorCores via "parallel" semantics.
    if n <= 128:
        tb = -(-n // 8) * 8
        n_pad = tb
    else:
        tb = 128
        n_pad = -(-n // tb) * tb

    # Pad rows (batch) and lanes (input features) with zeros; the extra weight
    # rows/columns are zero so padding never changes the real outputs.  This
    # pad fuses into the surrounding jit (single cheap copy).
    if n_pad != n or k_in_pad != k_in:
        x = jnp.pad(x, ((0, n_pad - n), (0, k_in_pad - k_in)))

    def _full(arr):  # whole-array block, constant index map (weights / biases)
        return pl.BlockSpec(arr.shape, lambda i: (0, 0))

    out = pl.pallas_call(
        functools.partial(_fused_forward_kernel, pool_chunk=pool_chunk),
        out_shape=jax.ShapeDtypeStruct((n_pad, l3), jnp.float32),
        grid_spec=pltpu.PrefetchScalarGridSpec(
            num_scalar_prefetch=0,
            grid=(n_pad // tb,),
            in_specs=[
                pl.BlockSpec((tb, k_in_pad), lambda i: (i, 0)),
                _full(w1), _full(b1),
                _full(w2), _full(b2),
                _full(w3), _full(b3),
            ],
            out_specs=pl.BlockSpec((tb, l3), lambda i: (i, 0)),
        ),
        compiler_params=pltpu.CompilerParams(
            dimension_semantics=("parallel",)),
    )(x, w1, b1, w2, b2, w3, b3)
    return out[:n]


# ----------------------- host-side parameter packing -------------------------

def _round_up(x, m):
    return -(-x // m) * m


def pack_params(params, obs_hwc_shape):
    """Fold each 2x2 conv (+bias) into a dense matrix on the flattened feature
    map.  Done once on the host (numpy), outside the hot path.  All internal
    lane dimensions are zero-padded to multiples of 128 so every in-kernel
    matmul operand and pooling slice is vreg-aligned.

    Flat layouts (row-major, lane dim = last):
      x_flat    : h*W_in*C_in + w*C_in + c                       (pad -> 128k)
      conv1 out : tap*CHpad + (ip*WP + jp)*16 + c   (tap = di*2+dj, pool partner)
      pooled    : (ip*WP + jp)*16 + c                            (pad -> 128k)
      conv2 out : (oh*W2 + ow)*32 + c                            (pad -> 128k)
      conv3 out : c*H3*W3 + oh*W3 + ow              (exact PyTorch CHW flatten)
    """
    h_in, w_in, c_in = obs_hwc_shape
    w1 = np.asarray(params["w1"], np.float32)   # (16, c_in, 2, 2)
    b1 = np.asarray(params["b1"], np.float32)
    w2 = np.asarray(params["w2"], np.float32)   # (32, 16, 2, 2)
    b2 = np.asarray(params["b2"], np.float32)
    w3 = np.asarray(params["w3"], np.float32)   # (64, 32, 2, 2)
    b3 = np.asarray(params["b3"], np.float32)
    c1, c2, c3 = 16, 32, 64

    h1c, w1c = h_in - 1, w_in - 1      # conv1 output (valid 2x2)
    hp, wp = h1c // 2, w1c // 2        # maxpool output (floor mode)
    h2c, w2c = hp - 1, wp - 1          # conv2 output
    h3c, w3c = h2c - 1, w2c - 1        # conv3 output

    k_in = h_in * w_in * c_in
    k_in_pad = _round_up(k_in, 128)

    ch = hp * wp * c1                  # one maxpool-tap chunk (pooled map size)
    ch_pad = _round_up(ch, 128)

    l2 = h2c * w2c * c2
    l2_pad = _round_up(l2, 128)

    hw3 = h3c * w3c
    l3 = c3 * hw3                      # embedding size (exact)

    # --- conv1 + bias, emitting the 4 pooling taps as 128-aligned lane chunks
    wb1 = np.zeros((k_in_pad, 4 * ch_pad), np.float32)
    bb1 = np.zeros((4 * ch_pad,), np.float32)
    for di in range(2):
        for dj in range(2):
            tap = di * 2 + dj
            bb1[tap * ch_pad: tap * ch_pad + ch] = np.tile(b1, hp * wp)
            for ip in range(hp):
                for jp in range(wp):
                    oh, ow = 2 * ip + di, 2 * jp + dj
                    lo = tap * ch_pad + (ip * wp + jp) * c1
                    for kh in range(2):
                        for kw in range(2):
                            ko = ((oh + kh) * w_in + (ow + kw)) * c_in
                            wb1[ko:ko + c_in, lo:lo + c1] += w1[:, :, kh, kw].T

    # --- conv2 + bias (pad rows/cols are zero -> ReLU(0)=0 -> no effect) ---
    wb2 = np.zeros((ch_pad, l2_pad), np.float32)
    bb2 = np.zeros((l2_pad,), np.float32)
    bb2[:l2] = np.tile(b2, h2c * w2c)
    for oh in range(h2c):
        for ow in range(w2c):
            lo = (oh * w2c + ow) * c2
            for kh in range(2):
                for kw in range(2):
                    ko = ((oh + kh) * wp + (ow + kw)) * c1
                    wb2[ko:ko + c1, lo:lo + c2] += w2[:, :, kh, kw].T

    # --- conv3 + bias, output columns in PyTorch CHW-flatten order ---
    wb3 = np.zeros((l2_pad, l3), np.float32)
    bb3 = np.repeat(b3, hw3)
    for oh in range(h3c):
        for ow in range(w3c):
            pos = oh * w3c + ow
            for kh in range(2):
                for kw in range(2):
                    ko = ((oh + kh) * w2c + (ow + kw)) * c2
                    wb3[ko:ko + c2, pos::hw3] += w3[:, :, kh, kw].T

    return dict(
        W1=jnp.asarray(wb1), B1=jnp.asarray(bb1.reshape(1, -1)),
        W2=jnp.asarray(wb2), B2=jnp.asarray(bb2.reshape(1, -1)),
        W3=jnp.asarray(wb3), B3=jnp.asarray(bb3.reshape(1, -1)),
    )


# ------------------------------ parameter init -------------------------------

def init_params(key, c_in):
    """Deterministic init, shapes identical to the nn.Conv2d layers."""
    ks = jax.random.split(key, 6)

    def conv_params(kw_key, kb_key, cout, cin):
        fan_in = cin * 2 * 2
        bound = 1.0 / np.sqrt(fan_in)
        w = jax.random.uniform(kw_key, (cout, cin, 2, 2), jnp.float32, -bound, bound)
        b = jax.random.uniform(kb_key, (cout,), jnp.float32, -bound, bound)
        return w, b

    w1, b1 = conv_params(ks[0], ks[1], 16, c_in)
    w2, b2 = conv_params(ks[2], ks[3], 32, 16)
    w3, b3 = conv_params(ks[4], ks[5], 64, 32)
    return dict(w1=w1, b1=b1, w2=w2, b2=b2, w3=w3, b3=b3)


# ------------------------- pure-JAX reference check --------------------------

def reference_forward(obs_hwc, params):
    """XLA reference at HIGHEST precision."""
    def conv_relu(x, w, b):
        y = jax.lax.conv_general_dilated(
            x, jnp.transpose(w, (2, 3, 1, 0)),
            window_strides=(1, 1), padding="VALID",
            dimension_numbers=("NHWC", "HWIO", "NHWC"),
            precision=jax.lax.Precision.HIGHEST,
        )
        return jnp.maximum(y + b, 0.0)

    x = conv_relu(obs_hwc, params["w1"], params["b1"])
    nb, h, w, c = x.shape
    x = x[:, : h // 2 * 2, : w // 2 * 2, :]
    x = x.reshape(nb, h // 2, 2, w // 2, 2, c).max(axis=(2, 4))
    x = conv_relu(x, params["w2"], params["b2"])
    x = conv_relu(x, params["w3"], params["b3"])
    x = jnp.transpose(x, (0, 3, 1, 2))
    return x.reshape(nb, -1)


# ----------------------------------- main ------------------------------------

if __name__ == "__main__":
    obs_space = (9, 9, 3)   # (H, W, C) -> transpose_needed=True in the module
    batch = 4

    key = jax.random.PRNGKey(0)
    k_obs, k_par = jax.random.split(key)
    obs = jax.random.uniform(k_obs, (batch,) + obs_space, jnp.float32)
    params = init_params(k_par, c_in=obs_space[2])
    packed = pack_params(params, obs_space)

    fwd = jax.jit(minigrid_env_model_forward)
    out = jax.block_until_ready(fwd(obs, packed))

    n, m, _ = obs_space
    embedding_size = ((n - 1) // 2 - 2) * ((m - 1) // 2 - 2) * 64
    assert out.shape == (batch, embedding_size), out.shape

    # Kernel matmuls run at default MXU precision (bf16-pass multiply, f32
    # accumulate); tolerance sized for that vs the HIGHEST-precision reference.
    ref = reference_forward(obs, params)
    np.testing.assert_allclose(np.asarray(out), np.asarray(ref), rtol=2e-2, atol=2e-2)
    print("KERNEL_OK")
</pallas_src>

<mosaic_0001>
module attributes {stable_mosaic.version = 11 : i64} {
  func.func @_fused_forward_kernel(%arg0: i32, %arg1: memref<8x256xf32, #tpu.memory_space<vmem>>, %arg2: memref<256x1024xf32, #tpu.memory_space<vmem>>, %arg3: memref<1x1024xf32, #tpu.memory_space<vmem>>, %arg4: memref<256x384xf32, #tpu.memory_space<vmem>>, %arg5: memref<1x384xf32, #tpu.memory_space<vmem>>, %arg6: memref<384x256xf32, #tpu.memory_space<vmem>>, %arg7: memref<1x256xf32, #tpu.memory_space<vmem>>, %arg8: memref<8x256xf32, #tpu.memory_space<vmem>>) attributes {dimension_semantics = [#tpu.dimension_semantics<parallel>], iteration_bounds = array<i64: 1>, scalar_prefetch = 0 : i64, scratch_operands = 0 : i64, tpu.core_type = #tpu.core_type<tc>, window_params = [{transform_indices = @transform_0, window_bounds = array<i64: 8, 256>}, {pipeline_mode = #tpu.pipeline_mode<synchronous>, transform_indices = @transform_1, window_bounds = array<i64: 256, 1024>}, {pipeline_mode = #tpu.pipeline_mode<synchronous>, transform_indices = @transform_2, window_bounds = array<i64: 1, 1024>}, {pipeline_mode = #tpu.pipeline_mode<synchronous>, transform_indices = @transform_3, window_bounds = array<i64: 256, 384>}, {pipeline_mode = #tpu.pipeline_mode<synchronous>, transform_indices = @transform_4, window_bounds = array<i64: 1, 384>}, {pipeline_mode = #tpu.pipeline_mode<synchronous>, transform_indices = @transform_5, window_bounds = array<i64: 384, 256>}, {pipeline_mode = #tpu.pipeline_mode<synchronous>, transform_indices = @transform_6, window_bounds = array<i64: 1, 256>}, {transform_indices = @transform_7, window_bounds = array<i64: 8, 256>}]} {
    %c0 = arith.constant 0 : index
    %c0_0 = arith.constant 0 : index
    %0 = vector.load %arg1[%c0, %c0_0] : memref<8x256xf32, #tpu.memory_space<vmem>>, vector<8x256xf32>
    %c0_1 = arith.constant 0 : index
    %c0_2 = arith.constant 0 : index
    %1 = vector.load %arg2[%c0_1, %c0_2] : memref<256x1024xf32, #tpu.memory_space<vmem>>, vector<256x1024xf32>
    %cst = arith.constant dense<0.000000e+00> : vector<8x1024xf32>
    %2 = tpu.matmul %0, %1, %cst {dimension_numbers = #tpu.dot_dimension_numbers<[1], [0], [0], [1], [0, 0, 1, 1], [], []>} : vector<8x256xf32>, vector<256x1024xf32>, vector<8x1024xf32> -> vector<8x1024xf32>
    %c0_3 = arith.constant 0 : index
    %c0_4 = arith.constant 0 : index
    %3 = vector.load %arg3[%c0_3, %c0_4] : memref<1x1024xf32, #tpu.memory_space<vmem>>, vector<1x1024xf32>
    %4 = vector.broadcast %3 : vector<1x1024xf32> to vector<8x1024xf32>
    %5 = arith.addf %2, %4 : vector<8x1024xf32>
    %cst_5 = arith.constant 0.000000e+00 : f32
    %6 = vector.broadcast %cst_5 : f32 to vector<8x1024xf32>
    %7 = arith.maximumf %5, %6 : vector<8x1024xf32>
    %8 = vector.extract_strided_slice %7 {offsets = [0, 0], sizes = [8, 256], strides = [1, 1]} : vector<8x1024xf32> to vector<8x256xf32>
    %9 = vector.extract_strided_slice %7 {offsets = [0, 256], sizes = [8, 256], strides = [1, 1]} : vector<8x1024xf32> to vector<8x256xf32>
    %10 = arith.maximumf %8, %9 : vector<8x256xf32>
    %11 = vector.extract_strided_slice %7 {offsets = [0, 512], sizes = [8, 256], strides = [1, 1]} : vector<8x1024xf32> to vector<8x256xf32>
    %12 = vector.extract_strided_slice %7 {offsets = [0, 768], sizes = [8, 256], strides = [1, 1]} : vector<8x1024xf32> to vector<8x256xf32>
    %13 = arith.maximumf %11, %12 : vector<8x256xf32>
    %14 = arith.maximumf %10, %13 : vector<8x256xf32>
    %c0_6 = arith.constant 0 : index
    %c0_7 = arith.constant 0 : index
    %15 = vector.load %arg4[%c0_6, %c0_7] : memref<256x384xf32, #tpu.memory_space<vmem>>, vector<256x384xf32>
    %cst_8 = arith.constant dense<0.000000e+00> : vector<8x384xf32>
    %16 = tpu.matmul %14, %15, %cst_8 {dimension_numbers = #tpu.dot_dimension_numbers<[1], [0], [0], [1], [0, 0, 1, 1], [], []>} : vector<8x256xf32>, vector<256x384xf32>, vector<8x384xf32> -> vector<8x384xf32>
    %c0_9 = arith.constant 0 : index
    %c0_10 = arith.constant 0 : index
    %17 = vector.load %arg5[%c0_9, %c0_10] : memref<1x384xf32, #tpu.memory_space<vmem>>, vector<1x384xf32>
    %18 = vector.broadcast %17 : vector<1x384xf32> to vector<8x384xf32>
    %19 = arith.addf %16, %18 : vector<8x384xf32>
    %cst_11 = arith.constant 0.000000e+00 : f32
    %20 = vector.broadcast %cst_11 : f32 to vector<8x384xf32>
    %21 = arith.maximumf %19, %20 : vector<8x384xf32>
    %c0_12 = arith.constant 0 : index
    %c0_13 = arith.constant 0 : index
    %22 = vector.load %arg6[%c0_12, %c0_13] : memref<384x256xf32, #tpu.memory_space<vmem>>, vector<384x256xf32>
    %cst_14 = arith.constant dense<0.000000e+00> : vector<8x256xf32>
    %23 = tpu.matmul %21, %22, %cst_14 {dimension_numbers = #tpu.dot_dimension_numbers<[1], [0], [0], [1], [0, 0, 1, 1], [], []>} : vector<8x384xf32>, vector<384x256xf32>, vector<8x256xf32> -> vector<8x256xf32>
    %c0_15 = arith.constant 0 : index
    %c0_16 = arith.constant 0 : index
    %24 = vector.load %arg7[%c0_15, %c0_16] : memref<1x256xf32, #tpu.memory_space<vmem>>, vector<1x256xf32>
    %25 = vector.broadcast %24 : vector<1x256xf32> to vector<8x256xf32>
    %26 = arith.addf %23, %25 : vector<8x256xf32>
    %cst_17 = arith.constant 0.000000e+00 : f32
    %27 = vector.broadcast %cst_17 : f32 to vector<8x256xf32>
    %28 = arith.maximumf %26, %27 : vector<8x256xf32>
    %c0_18 = arith.constant 0 : index
    %c0_19 = arith.constant 0 : index
    %29 = vector.load %arg8[%c0_18, %c0_19] : memref<8x256xf32, #tpu.memory_space<vmem>>, vector<8x256xf32>
    tpu.vector_store %arg8[%c0_18, %c0_19], %28 {strides = array<i32>} : memref<8x256xf32, #tpu.memory_space<vmem>>, vector<8x256xf32>,
    return
  }
  func.func @transform_0(%arg0: i32) -> (i32, i32) {
    %c0_i32 = arith.constant 0 : i32
    %c0_i32_0 = arith.constant 0 : i32
    return %arg0, %c0_i32 : i32, i32
  }
  func.func @transform_1(%arg0: i32) -> (i32, i32) {
    %c0_i32 = arith.constant 0 : i32
    %c0_i32_0 = arith.constant 0 : i32
    %c0_i32_1 = arith.constant 0 : i32
    return %c0_i32, %c0_i32_0 : i32, i32
  }
  func.func @transform_2(%arg0: i32) -> (i32, i32) {
    %c0_i32 = arith.constant 0 : i32
    %c0_i32_0 = arith.constant 0 : i32
    %c0_i32_1 = arith.constant 0 : i32
    return %c0_i32, %c0_i32_0 : i32, i32
  }
  func.func @transform_3(%arg0: i32) -> (i32, i32) {
    %c0_i32 = arith.constant 0 : i32
    %c0_i32_0 = arith.constant 0 : i32
    %c0_i32_1 = arith.constant 0 : i32
    return %c0_i32, %c0_i32_0 : i32, i32
  }
  func.func @transform_4(%arg0: i32) -> (i32, i32) {
    %c0_i32 = arith.constant 0 : i32
    %c0_i32_0 = arith.constant 0 : i32
    %c0_i32_1 = arith.constant 0 : i32
    return %c0_i32, %c0_i32_0 : i32, i32
  }
  func.func @transform_5(%arg0: i32) -> (i32, i32) {
    %c0_i32 = arith.constant 0 : i32
    %c0_i32_0 = arith.constant 0 : i32
    %c0_i32_1 = arith.constant 0 : i32
    return %c0_i32, %c0_i32_0 : i32, i32
  }
  func.func @transform_6(%arg0: i32) -> (i32, i32) {
    %c0_i32 = arith.constant 0 : i32
    %c0_i32_0 = arith.constant 0 : i32
    %c0_i32_1 = arith.constant 0 : i32
    return %c0_i32, %c0_i32_0 : i32, i32
  }
  func.func @transform_7(%arg0: i32) -> (i32, i32) {
    %c0_i32 = arith.constant 0 : i32
    %c0_i32_0 = arith.constant 0 : i32
    return %arg0, %c0_i32 : i32, i32
  }
}

</mosaic_0001>

<bundles_post_ra>
// kernel: minigrid_env_model_forward.1
= control target key start
LH: loop header
LB: loop body
LE: loop exit
PB: predicated region body
PF: predicated region fallthrough
CT: control target
= control target key end

     0   :  { %12 = vsyncpa [#allocation3], 0  ;;  %s2148_s0 = inlined_call_operand.vmem [shape: f32[8,256], index: 0, kind: input, shape index: {}]   ;;  %s2149_s1 = inlined_call_operand.hbm [shape: f32[256,1024], index: 1, kind: input, shape index: {}]   ;;  %s2150_s2 = inlined_call_operand.vmem [shape: f32[1,1024], index: 2, kind: input, shape index: {}]   ;;  %s2151_s3 = inlined_call_operand.vmem [shape: f32[256,384], index: 3, kind: input, shape index: {}]   ;;  %s2152_s4 = inlined_call_operand.vmem [shape: f32[1,384], index: 4, kind: input, shape index: {}]   ;;  %s2153_s5 = inlined_call_operand.hbm [shape: f32[384,256], index: 5, kind: input, shape index: {}]   ;;  %s2154_s6 = inlined_call_operand.vmem [shape: f32[1,256], index: 6, kind: input, shape index: {}]   ;;  %s2155_s7 = inlined_call_operand.vmem [shape: f32[8,256], index: 7, kind: output, shape index: {}]  }
   0x1   :  { %13 = vsyncpa [#allocation5], 0  ;;  %s1711_s24 = smov [#allocation2]   ;;  %s1663_s28 = scalar_lea.hbm %s2149_s1, 32768 }
   0x2   :  { %s21_s25 = sshll.u32 %s1711_s24, 4  ;;  %p1664_p0 = scmp.ne.s32.totalorder %s2149_s1, %s1663_s28  ;;  %s22_s25 = int_to_ptr.vmem [resolvable:$true] %s21_s25 }
   0x3   :  { %p1667_p1 = scmp.lt.u32.totalorder %s1663_s28, %s2149_s1 }
   0x5   :  { %p1669_p2 = pnand %p1667_p1, %p1664_p0 }
   0x7   :  { %1672 = shalt.err (!%p1669_p2)
}
   0x8   :  { %s1673_s10 = scalar_lea.vmem %s22_s25, 32768  ;;  %p1678_p4 = scmp.lt.s32.totalorder %s22_s25, %s22_s25 }
   0x9   :  { %p1674_p3 = scmp.ne.s32.totalorder %s22_s25, %s1673_s10  ;;  %p1679_p5 = scmp.lt.s32.totalorder %s1673_s10, %s1673_s10 }
   0xb   :  { %p1680_p6 = por %p1679_p5, %p1678_p4 }
   0xd   :  { %p1681_p7 = pnand %p1680_p6, %p1674_p3 }
   0xf   :  { %1684 = shalt.err (!%p1681_p7)
}
  0x10   :  { %s1712_s11 = smov 1024   ;;  %s1713_s12 = smov 64  }
  0x11   :  { %27 = dma.hbm_to_vmem [thread:$0]  %s2149_s1, 32768, %s22_s25, [#allocation3], %s1712_s11, %s1712_s11, %s1713_s12  }
  0x12   :  { %s1714_s15 = smov [#allocation4]   ;;  %s1685_s19 = scalar_lea.hbm %s2153_s5, 12288 }
  0x13   :  { %s39_s16 = sshll.u32 %s1714_s15, 4  ;;  %p1686_p8 = scmp.ne.s32.totalorder %s2153_s5, %s1685_s19  ;;  %s40_s16 = int_to_ptr.vmem [resolvable:$true] %s39_s16 }
  0x14   :  { %p1689_p9 = scmp.lt.u32.totalorder %s1685_s19, %s2153_s5 }
  0x16   :  { %p1691_p10 = pnand %p1689_p9, %p1686_p8 }
  0x18   :  { %1694 = shalt.err (!%p1691_p10)
}
  0x19   :  { %s1695_s24 = scalar_lea.vmem %s40_s16, 12288  ;;  %p1700_p12 = scmp.lt.s32.totalorder %s40_s16, %s40_s16 }
  0x1a   :  { %p1696_p11 = scmp.ne.s32.totalorder %s40_s16, %s1695_s24  ;;  %p1701_p13 = scmp.lt.s32.totalorder %s1695_s24, %s1695_s24 }
  0x1c   :  { %p1702_p0 = por %p1701_p13, %p1700_p12 }
  0x1e   :  { %p1703_p1 = pnand %p1702_p0, %p1696_p11 }
  0x20   :  { %1706 = shalt.err (!%p1703_p1)
}
  0x21   :  { %s1715_s1 = smov 256   ;;  %s1716_s25 = smov 16  }
  0x22   :  { %45 = dma.hbm_to_vmem [thread:$0]  %s2153_s5, 12288, %s40_s16, [#allocation5], %s1715_s1, %s1715_s1, %s1716_s25  }
  0x23   :  { %1707 = dma.done.wait [#allocation3], 32768  }
  0x24   :  { %1708 = vsyncadd [#allocation3], 4294934528 }
  0x25   :  { %1709 = dma.done.wait [#allocation5], 12288  }
  0x26   :  { %1710 = vsyncadd [#allocation5], 4294955008  ;;  %v57_v0 = vld [vmem:[#allocation2 + $0x8] sm:$0xff]  ;;  %v59_v2 = vld [vmem:[#allocation2 + $0x18] sm:$0xff] }
  0x27   :  { %v65_v1 = vld [vmem:[#allocation2 + $0x48] sm:$0xff]  ;;  %v67_v4 = vld [vmem:[#allocation2 + $0x58] sm:$0xff]  ;;  %v56_v5 = vld [vmem:[#allocation2] sm:$0xff] }
  0x28   :  { %v1204_v3 = vpack.c.bf16 %v65_v1, %v57_v0  ;;  %v64_v6 = vld [vmem:[#allocation2 + $0x40] sm:$0xff]  ;;  %v1268_v7 = vpack.c.bf16 %v67_v4, %v59_v2  ;;  %v58_v9 = vld [vmem:[#allocation2 + $0x10] sm:$0xff]  ;;  %v73_v11 = vld [vmem:[#allocation2 + $0x88] sm:$0xff] }
  0x29   :  { %v1206_v8 = vpack.c.bf16 %v64_v6, %v56_v5  ;;  %v66_v10 = vld [vmem:[#allocation2 + $0x50] sm:$0xff]  ;;  %v81_v13 = vld [vmem:[#allocation2 + $0xc8] sm:$0xff]  ;;  %v75_v14 = vld [vmem:[#allocation2 + $0x98] sm:$0xff] }
  0x2a   :  { %1205 = vmatprep.subr.bf16.mxu0 %v1204_v3  ;;  %v1270_v12 = vpack.c.bf16 %v66_v10, %v58_v9  ;;  %v83_v15 = vld [vmem:[#allocation2 + $0xd8] sm:$0xff]  ;;  %1269 = vmatprep.subr.bf16.mxu1 %v1268_v7  ;;  %v1208_v16 = vpack.c.bf16 %v81_v13, %v73_v11  ;;  %v72_v18 = vld [vmem:[#allocation2 + $0x80] sm:$0xff]  ;;  %v74_v20 = vld [vmem:[#allocation2 + $0x90] sm:$0xff] }
  0x2b   :  { %1207 = vmatpush1.bf16.msra.mxu0 %v1206_v8  ;;  %v1272_v17 = vpack.c.bf16 %v83_v15, %v75_v14  ;;  %v80_v19 = vld [vmem:[#allocation2 + $0xc0] sm:$0xff]  ;;  %v82_v22 = vld [vmem:[#allocation2 + $0xd0] sm:$0xff]  ;;  %v89_v23 = vld [vmem:[#allocation2 + $0x108] sm:$0xff] }
  0x2c   :  { %1271 = vmatpush1.bf16.msra.mxu1 %v1270_v12  ;;  %v1210_v21 = vpack.c.bf16 %v80_v19, %v72_v18  ;;  %v97_v24 = vld [vmem:[#allocation2 + $0x148] sm:$0xff]  ;;  %1209 = vmatprep.subr.bf16.mxu0 %v1208_v16  ;;  %v1274_v25 = vpack.c.bf16 %v82_v22, %v74_v20  ;;  %v91_v27 = vld [vmem:[#allocation2 + $0x118] sm:$0xff]  ;;  %v88_v29 = vld [vmem:[#allocation2 + $0x100] sm:$0xff] }
  0x2d   :  { %1273 = vmatprep.subr.bf16.mxu1 %v1272_v17  ;;  %v1212_v26 = vpack.c.bf16 %v97_v24, %v89_v23  ;;  %v99_v28 = vld [vmem:[#allocation2 + $0x158] sm:$0xff]  ;;  %v96_v31 = vld [vmem:[#allocation2 + $0x140] sm:$0xff]  ;;  %v90_v32 = vld [vmem:[#allocation2 + $0x110] sm:$0xff] }
  0x2e   :  { %v1276_v30 = vpack.c.bf16 %v99_v28, %v91_v27  ;;  %v98_v33 = vld [vmem:[#allocation2 + $0x150] sm:$0xff]  ;;  %v1214_v34 = vpack.c.bf16 %v96_v31, %v88_v29  ;;  %v105_v35 = vld [vmem:[#allocation2 + $0x188] sm:$0xff]  ;;  %v107_v37 = vld [vmem:[#allocation2 + $0x198] sm:$0xff] }
  0x2f   :  { %1211 = vmatpush1.bf16.msra.mxu0 %v1210_v21  ;;  %v113_v36 = vld [vmem:[#allocation2 + $0x1c8] sm:$0xff]  ;;  %v1278_v38 = vpack.c.bf16 %v98_v33, %v90_v32  ;;  %v115_v40 = vld [vmem:[#allocation2 + $0x1d8] sm:$0xff]  ;;  %v104_v41 = vld [vmem:[#allocation2 + $0x180] sm:$0xff] }
  0x30   :  { %1275 = vmatpush1.bf16.msra.mxu1 %v1274_v25  ;;  %1213 = vmatprep.subr.bf16.mxu0 %v1212_v26  ;;  %v1216_v39 = vpack.c.bf16 %v113_v36, %v105_v35  ;;  %v112_v42 = vld [vmem:[#allocation2 + $0x1c0] sm:$0xff]  ;;  %v1280_v43 = vpack.c.bf16 %v115_v40, %v107_v37  ;;  %v106_v44 = vld [vmem:[#allocation2 + $0x190] sm:$0xff]  ;;  %v121_v46 = vld [vmem:[#allocation2 + $0x208] sm:$0xff] }
  0x31   :  { %1277 = vmatprep.subr.bf16.mxu1 %v1276_v30  ;;  %v114_v45 = vld [vmem:[#allocation2 + $0x1d0] sm:$0xff]  ;;  %v129_v47 = vld [vmem:[#allocation2 + $0x248] sm:$0xff]  ;;  %v123_v48 = vld [vmem:[#allocation2 + $0x218] sm:$0xff]  ;;  %v1218_v50 = vpack.c.bf16 %v112_v42, %v104_v41 }
  0x32   :  { %v131_v49 = vld [vmem:[#allocation2 + $0x258] sm:$0xff]  ;;  %v1282_v51 = vpack.c.bf16 %v114_v45, %v106_v44  ;;  %v1220_v52 = vpack.c.bf16 %v129_v47, %v121_v46  ;;  %v120_v53 = vld [vmem:[#allocation2 + $0x200] sm:$0xff]  ;;  %v122_v55 = vld [vmem:[#allocation2 + $0x210] sm:$0xff] }
  0x33   :  { %1215 = vmatpush1.bf16.msra.mxu0 %v1214_v34  ;;  %v128_v54 = vld [vmem:[#allocation2 + $0x240] sm:$0xff]  ;;  %v1284_v56 = vpack.c.bf16 %v131_v49, %v123_v48  ;;  %v130_v57 = vld [vmem:[#allocation2 + $0x250] sm:$0xff]  ;;  %v137_v58 = vld [vmem:[#allocation2 + $0x288] sm:$0xff] }
  0x34   :  { %1279 = vmatpush1.bf16.msra.mxu1 %v1278_v38  ;;  %1217 = vmatprep.subr.bf16.mxu0 %v1216_v39  ;;  %v145_v59 = vld [vmem:[#allocation2 + $0x2c8] sm:$0xff]  ;;  %v139_v60 = vld [vmem:[#allocation2 + $0x298] sm:$0xff]  ;;  %v1222_v62 = vpack.c.bf16 %v128_v54, %v120_v53  ;;  %v1286_v63 = vpack.c.bf16 %v130_v57, %v122_v55  ;;  %v136_v1 = vld [vmem:[#allocation2 + $0x280] sm:$0xff] }
  0x35   :  { %1281 = vmatprep.subr.bf16.mxu1 %v1280_v43  ;;  %v147_v61 = vld [vmem:[#allocation2 + $0x2d8] sm:$0xff]  ;;  %v1224_v0 = vpack.c.bf16 %v145_v59, %v137_v58  ;;  %v144_v2 = vld [vmem:[#allocation2 + $0x2c0] sm:$0xff]  ;;  %v138_v3 = vld [vmem:[#allocation2 + $0x290] sm:$0xff] }
  0x36   :  { %v1288_v4 = vpack.c.bf16 %v147_v61, %v139_v60  ;;  %v146_v5 = vld [vmem:[#allocation2 + $0x2d0] sm:$0xff]  ;;  %v153_v6 = vld [vmem:[#allocation2 + $0x308] sm:$0xff]  ;;  %v155_v8 = vld [vmem:[#allocation2 + $0x318] sm:$0xff]  ;;  %v1226_v10 = vpack.c.bf16 %v144_v2, %v136_v1 }
  0x37   :  { %1219 = vmatpush1.bf16.msra.mxu0 %v1218_v50  ;;  %v161_v7 = vld [vmem:[#allocation2 + $0x348] sm:$0xff]  ;;  %v163_v9 = vld [vmem:[#allocation2 + $0x358] sm:$0xff]  ;;  %v1290_v11 = vpack.c.bf16 %v146_v5, %v138_v3  ;;  %v152_v13 = vld [vmem:[#allocation2 + $0x300] sm:$0xff] }
  0x38   :  { %1283 = vmatpush1.bf16.msra.mxu1 %v1282_v51  ;;  %1221 = vmatprep.subr.bf16.mxu0 %v1220_v52  ;;  %v1228_v12 = vpack.c.bf16 %v161_v7, %v153_v6  ;;  %v160_v14 = vld [vmem:[#allocation2 + $0x340] sm:$0xff]  ;;  %v154_v15 = vld [vmem:[#allocation2 + $0x310] sm:$0xff]  ;;  %v1292_v16 = vpack.c.bf16 %v163_v9, %v155_v8  ;;  %v169_v18 = vld [vmem:[#allocation2 + $0x388] sm:$0xff] }
  0x39   :  { %1285 = vmatprep.subr.bf16.mxu1 %v1284_v56  ;;  %v162_v17 = vld [vmem:[#allocation2 + $0x350] sm:$0xff]  ;;  %v177_v19 = vld [vmem:[#allocation2 + $0x3c8] sm:$0xff]  ;;  %v171_v20 = vld [vmem:[#allocation2 + $0x398] sm:$0xff]  ;;  %v1230_v22 = vpack.c.bf16 %v160_v14, %v152_v13 }
  0x3a   :  { %v179_v21 = vld [vmem:[#allocation2 + $0x3d8] sm:$0xff]  ;;  %v1294_v23 = vpack.c.bf16 %v162_v17, %v154_v15  ;;  %v1232_v24 = vpack.c.bf16 %v177_v19, %v169_v18  ;;  %v168_v25 = vld [vmem:[#allocation2 + $0x380] sm:$0xff]  ;;  %v170_v27 = vld [vmem:[#allocation2 + $0x390] sm:$0xff] }
  0x3b   :  { %1223 = vmatpush1.bf16.msra.mxu0 %v1222_v62  ;;  %v176_v26 = vld [vmem:[#allocation2 + $0x3c0] sm:$0xff]  ;;  %v1296_v28 = vpack.c.bf16 %v179_v21, %v171_v20  ;;  %v178_v29 = vld [vmem:[#allocation2 + $0x3d0] sm:$0xff]  ;;  %v185_v30 = vld [vmem:[#allocation2 + $0x408] sm:$0xff] }
  0x3c   :  { %1287 = vmatpush1.bf16.msra.mxu1 %v1286_v63  ;;  %1225 = vmatprep.subr.bf16.mxu0 %v1224_v0  ;;  %v193_v31 = vld [vmem:[#allocation2 + $0x448] sm:$0xff]  ;;  %v187_v32 = vld [vmem:[#allocation2 + $0x418] sm:$0xff]  ;;  %v1234_v34 = vpack.c.bf16 %v176_v26, %v168_v25  ;;  %v1298_v35 = vpack.c.bf16 %v178_v29, %v170_v27  ;;  %v184_v37 = vld [vmem:[#allocation2 + $0x400] sm:$0xff] }
  0x3d   :  { %1289 = vmatprep.subr.bf16.mxu1 %v1288_v4  ;;  %v195_v33 = vld [vmem:[#allocation2 + $0x458] sm:$0xff]  ;;  %v1236_v36 = vpack.c.bf16 %v193_v31, %v185_v30  ;;  %v192_v38 = vld [vmem:[#allocation2 + $0x440] sm:$0xff]  ;;  %v186_v39 = vld [vmem:[#allocation2 + $0x410] sm:$0xff] }
  0x3e   :  { %v1300_v40 = vpack.c.bf16 %v195_v33, %v187_v32  ;;  %v194_v41 = vld [vmem:[#allocation2 + $0x450] sm:$0xff]  ;;  %v201_v42 = vld [vmem:[#allocation2 + $0x488] sm:$0xff]  ;;  %v203_v44 = vld [vmem:[#allocation2 + $0x498] sm:$0xff]  ;;  %v1238_v46 = vpack.c.bf16 %v192_v38, %v184_v37 }
  0x3f   :  { %1227 = vmatpush1.bf16.msra.mxu0 %v1226_v10  ;;  %v209_v43 = vld [vmem:[#allocation2 + $0x4c8] sm:$0xff]  ;;  %v211_v45 = vld [vmem:[#allocation2 + $0x4d8] sm:$0xff]  ;;  %v1302_v47 = vpack.c.bf16 %v194_v41, %v186_v39  ;;  %v200_v49 = vld [vmem:[#allocation2 + $0x480] sm:$0xff] }
  0x40   :  { %1291 = vmatpush1.bf16.msra.mxu1 %v1290_v11  ;;  %1229 = vmatprep.subr.bf16.mxu0 %v1228_v12  ;;  %v1240_v48 = vpack.c.bf16 %v209_v43, %v201_v42  ;;  %v208_v50 = vld [vmem:[#allocation2 + $0x4c0] sm:$0xff]  ;;  %v202_v51 = vld [vmem:[#allocation2 + $0x490] sm:$0xff]  ;;  %v1304_v52 = vpack.c.bf16 %v211_v45, %v203_v44  ;;  %v217_v54 = vld [vmem:[#allocation2 + $0x508] sm:$0xff] }
  0x41   :  { %1293 = vmatprep.subr.bf16.mxu1 %v1292_v16  ;;  %v210_v53 = vld [vmem:[#allocation2 + $0x4d0] sm:$0xff]  ;;  %v225_v55 = vld [vmem:[#allocation2 + $0x548] sm:$0xff]  ;;  %v219_v56 = vld [vmem:[#allocation2 + $0x518] sm:$0xff]  ;;  %v1242_v58 = vpack.c.bf16 %v208_v50, %v200_v49 }
  0x42   :  { %v227_v57 = vld [vmem:[#allocation2 + $0x558] sm:$0xff]  ;;  %v1306_v59 = vpack.c.bf16 %v210_v53, %v202_v51  ;;  %v1244_v60 = vpack.c.bf16 %v225_v55, %v217_v54  ;;  %v216_v61 = vld [vmem:[#allocation2 + $0x500] sm:$0xff]  ;;  %v218_v63 = vld [vmem:[#allocation2 + $0x510] sm:$0xff] }
  0x43   :  { %1231 = vmatpush1.bf16.msra.mxu0 %v1230_v22  ;;  %v224_v62 = vld [vmem:[#allocation2 + $0x540] sm:$0xff]  ;;  %v1308_v0 = vpack.c.bf16 %v227_v57, %v219_v56  ;;  %v226_v1 = vld [vmem:[#allocation2 + $0x550] sm:$0xff]  ;;  %v233_v2 = vld [vmem:[#allocation2 + $0x588] sm:$0xff] }
  0x44   :  { %1295 = vmatpush1.bf16.msra.mxu1 %v1294_v23  ;;  %1233 = vmatprep.subr.bf16.mxu0 %v1232_v24  ;;  %v241_v3 = vld [vmem:[#allocation2 + $0x5c8] sm:$0xff]  ;;  %v235_v4 = vld [vmem:[#allocation2 + $0x598] sm:$0xff]  ;;  %v1246_v6 = vpack.c.bf16 %v224_v62, %v216_v61  ;;  %v232_v7 = vld [vmem:[#allocation2 + $0x580] sm:$0xff]  ;;  %v1310_v8 = vpack.c.bf16 %v226_v1, %v218_v63 }
  0x45   :  { %1297 = vmatprep.subr.bf16.mxu1 %v1296_v28  ;;  %v243_v5 = vld [vmem:[#allocation2 + $0x5d8] sm:$0xff]  ;;  %v1248_v9 = vpack.c.bf16 %v241_v3, %v233_v2  ;;  %v240_v10 = vld [vmem:[#allocation2 + $0x5c0] sm:$0xff]  ;;  %v234_v11 = vld [vmem:[#allocation2 + $0x590] sm:$0xff] }
  0x46   :  { %v242_v12 = vld [vmem:[#allocation2 + $0x5d0] sm:$0xff]  ;;  %v1312_v13 = vpack.c.bf16 %v243_v5, %v235_v4  ;;  %v249_v14 = vld [vmem:[#allocation2 + $0x608] sm:$0xff]  ;;  %v251_v17 = vld [vmem:[#allocation2 + $0x618] sm:$0xff]  ;;  %v1250_v19 = vpack.c.bf16 %v240_v10, %v232_v7 }
  0x47   :  { %1235 = vmatpush1.bf16.msra.mxu0 %v1234_v34  ;;  %v257_v15 = vld [vmem:[#allocation2 + $0x648] sm:$0xff]  ;;  %v259_v18 = vld [vmem:[#allocation2 + $0x658] sm:$0xff]  ;;  %v1314_v20 = vpack.c.bf16 %v242_v12, %v234_v11  ;;  %v248_v22 = vld [vmem:[#allocation2 + $0x600] sm:$0xff] }
  0x48   :  { %1299 = vmatpush1.bf16.msra.mxu1 %v1298_v35  ;;  %1237 = vmatprep.subr.bf16.mxu0 %v1236_v36  ;;  %v1785_v16 = vld [vmem:[%s2148_s0 + $0x8] sm:$0xff]  ;;  %v1252_v21 = vpack.c.bf16 %v257_v15, %v249_v14  ;;  %v256_v23 = vld [vmem:[#allocation2 + $0x640] sm:$0xff]  ;;  %v250_v24 = vld [vmem:[#allocation2 + $0x610] sm:$0xff]  ;;  %v1316_v25 = vpack.c.bf16 %v259_v18, %v251_v17 }
  0x49   :  { %1301 = vmatprep.subr.bf16.mxu1 %v1300_v40  ;;  %418 = vmatprep.mubr.f32.mxu0 %v1785_v16  ;;  %v258_v26 = vld [vmem:[#allocation2 + $0x650] sm:$0xff]  ;;  %v265_v27 = vld [vmem:[#allocation2 + $0x688] sm:$0xff]  ;;  %v267_v29 = vld [vmem:[#allocation2 + $0x698] sm:$0xff]  ;;  %v1254_v31 = vpack.c.bf16 %v256_v23, %v248_v22 }
  0x4a   :  { %489 = vmatprep.mubr.f32.mxu1 %v1785_v16  ;;  %v273_v28 = vld [vmem:[#allocation2 + $0x6c8] sm:$0xff]  ;;  %v275_v30 = vld [vmem:[#allocation2 + $0x6d8] sm:$0xff]  ;;  %v1318_v32 = vpack.c.bf16 %v258_v26, %v250_v24  ;;  %v264_v34 = vld [vmem:[#allocation2 + $0x680] sm:$0xff] }
  0x4b   :  { %1239 = vmatpush1.bf16.msra.mxu0 %v1238_v46  ;;  %v1256_v33 = vpack.c.bf16 %v273_v28, %v265_v27  ;;  %v272_v35 = vld [vmem:[#allocation2 + $0x6c0] sm:$0xff]  ;;  %v266_v36 = vld [vmem:[#allocation2 + $0x690] sm:$0xff]  ;;  %v1320_v37 = vpack.c.bf16 %v275_v30, %v267_v29  ;;  %v281_v39 = vld [vmem:[#allocation2 + $0x708] sm:$0xff] }
  0x4c   :  { %1303 = vmatpush1.bf16.msra.mxu1 %v1302_v47  ;;  %1241 = vmatprep.subr.bf16.mxu0 %v1240_v48  ;;  %v274_v38 = vld [vmem:[#allocation2 + $0x6d0] sm:$0xff]  ;;  %v289_v40 = vld [vmem:[#allocation2 + $0x748] sm:$0xff]  ;;  %v283_v41 = vld [vmem:[#allocation2 + $0x718] sm:$0xff]  ;;  %v1258_v43 = vpack.c.bf16 %v272_v35, %v264_v34 }
  0x4d   :  { %1305 = vmatprep.subr.bf16.mxu1 %v1304_v52  ;;  %v291_v42 = vld [vmem:[#allocation2 + $0x758] sm:$0xff]  ;;  %v1322_v44 = vpack.c.bf16 %v274_v38, %v266_v36  ;;  %v1260_v45 = vpack.c.bf16 %v289_v40, %v281_v39  ;;  %v280_v46 = vld [vmem:[#allocation2 + $0x700] sm:$0xff]  ;;  %v282_v48 = vld [vmem:[#allocation2 + $0x710] sm:$0xff] }
  0x4e   :  { %v288_v47 = vld [vmem:[#allocation2 + $0x740] sm:$0xff]  ;;  %v1324_v49 = vpack.c.bf16 %v291_v42, %v283_v41  ;;  %v290_v50 = vld [vmem:[#allocation2 + $0x750] sm:$0xff]  ;;  %v297_v51 = vld [vmem:[#allocation2 + $0x788] sm:$0xff] }
  0x4f   :  { %1243 = vmatpush1.bf16.msra.mxu0 %v1242_v58  ;;  %v305_v52 = vld [vmem:[#allocation2 + $0x7c8] sm:$0xff]  ;;  %v299_v53 = vld [vmem:[#allocation2 + $0x798] sm:$0xff]  ;;  %v1262_v55 = vpack.c.bf16 %v288_v47, %v280_v46  ;;  %v1326_v56 = vpack.c.bf16 %v290_v50, %v282_v48  ;;  %v296_v58 = vld [vmem:[#allocation2 + $0x780] sm:$0xff] }
  0x50   :  { %1307 = vmatpush1.bf16.msra.mxu1 %v1306_v59  ;;  %1245 = vmatprep.subr.bf16.mxu0 %v1244_v60  ;;  %v307_v54 = vld [vmem:[#allocation2 + $0x7d8] sm:$0xff]  ;;  %v1264_v57 = vpack.c.bf16 %v305_v52, %v297_v51  ;;  %v304_v59 = vld [vmem:[#allocation2 + $0x7c0] sm:$0xff]  ;;  %v298_v60 = vld [vmem:[#allocation2 + $0x790] sm:$0xff] }
  0x51   :  { %1309 = vmatprep.subr.bf16.mxu1 %v1308_v0  ;;  %v1328_v61 = vpack.c.bf16 %v307_v54, %v299_v53  ;;  %v306_v62 = vld [vmem:[#allocation2 + $0x7d0] sm:$0xff]  ;;  %v61_v63 = vld [vmem:[#allocation2 + $0x28] sm:$0xff]  ;;  %v63_v1 = vld [vmem:[#allocation2 + $0x38] sm:$0xff]  ;;  %v1266_v3 = vpack.c.bf16 %v304_v59, %v296_v58 }
  0x52   :  { %v69_v0 = vld [vmem:[#allocation2 + $0x68] sm:$0xff]  ;;  %v71_v2 = vld [vmem:[#allocation2 + $0x78] sm:$0xff]  ;;  %v1330_v4 = vpack.c.bf16 %v306_v62, %v298_v60  ;;  %v68_v7 = vld [vmem:[#allocation2 + $0x60] sm:$0xff] }
  0x53   :  { %1247 = vmatpush1.bf16.msra.mxu0 %v1246_v6  ;;  %v1332_v5 = vpack.c.bf16 %v69_v0, %v61_v63  ;;  %v60_v6 = vld [vmem:[#allocation2 + $0x20] sm:$0xff]  ;;  %v70_v10 = vld [vmem:[#allocation2 + $0x70] sm:$0xff]  ;;  %v77_v11 = vld [vmem:[#allocation2 + $0xa8] sm:$0xff] }
  0x54   :  { %1311 = vmatpush1.bf16.msra.mxu1 %v1310_v8  ;;  %1249 = vmatprep.subr.bf16.mxu0 %v1248_v9  ;;  %v62_v8 = vld [vmem:[#allocation2 + $0x30] sm:$0xff]  ;;  %v1396_v9 = vpack.c.bf16 %v71_v2, %v63_v1  ;;  %v85_v12 = vld [vmem:[#allocation2 + $0xe8] sm:$0xff]  ;;  %v87_v14 = vld [vmem:[#allocation2 + $0xf8] sm:$0xff]  ;;  %v1334_v17 = vpack.c.bf16 %v68_v7, %v60_v6 }
  0x55   :  { %1313 = vmatprep.subr.bf16.mxu1 %v1312_v13  ;;  %v79_v13 = vld [vmem:[#allocation2 + $0xb8] sm:$0xff]  ;;  %v1792_v15 = vld [vmem:[%s2148_s0] sm:$0xff]  ;;  %v1398_v18 = vpack.c.bf16 %v70_v10, %v62_v8  ;;  %v78_v22 = vld [vmem:[#allocation2 + $0xb0] sm:$0xff] }
  0x56   :  { %v1400_v23 = vpack.c.bf16 %v87_v14, %v79_v13  ;;  %v86_v24 = vld [vmem:[#allocation2 + $0xf0] sm:$0xff]  ;;  %v101_v26 = vld [vmem:[#allocation2 + $0x168] sm:$0xff]  ;;  %v95_v27 = vld [vmem:[#allocation2 + $0x138] sm:$0xff] }
  0x57   :  { %1251 = vmatpush1.bf16.msra.mxu0 %v1250_v19  ;;  %v1336_v19 = vpack.c.bf16 %v85_v12, %v77_v11  ;;  %v103_v28 = vld [vmem:[#allocation2 + $0x178] sm:$0xff]  ;;  %v1402_v30 = vpack.c.bf16 %v86_v24, %v78_v22  ;;  %v94_v34 = vld [vmem:[#allocation2 + $0x130] sm:$0xff]  ;;  %v117_v38 = vld [vmem:[#allocation2 + $0x1e8] sm:$0xff] }
  0x58   :  { %1315 = vmatpush1.bf16.msra.mxu1 %v1314_v20  ;;  %1253 = vmatprep.subr.bf16.mxu0 %v1252_v21  ;;  %v76_v20 = vld [vmem:[#allocation2 + $0xa0] sm:$0xff]  ;;  %v1404_v35 = vpack.c.bf16 %v103_v28, %v95_v27  ;;  %v102_v36 = vld [vmem:[#allocation2 + $0x170] sm:$0xff]  ;;  %v111_v39 = vld [vmem:[#allocation2 + $0x1b8] sm:$0xff] }
  0x59   :  { %1317 = vmatprep.subr.bf16.mxu1 %v1316_v25  ;;  %v84_v21 = vld [vmem:[#allocation2 + $0xe0] sm:$0xff]  ;;  %v93_v25 = vld [vmem:[#allocation2 + $0x128] sm:$0xff]  ;;  %v119_v40 = vld [vmem:[#allocation2 + $0x1f8] sm:$0xff]  ;;  %v1406_v42 = vpack.c.bf16 %v102_v36, %v94_v34 }
  0x5a   :  { %v1338_v29 = vpack.c.bf16 %v84_v21, %v76_v20  ;;  %v110_v46 = vld [vmem:[#allocation2 + $0x1b0] sm:$0xff]  ;;  %v1408_v47 = vpack.c.bf16 %v119_v40, %v111_v39  ;;  %v133_v50 = vld [vmem:[#allocation2 + $0x268] sm:$0xff]  ;;  %v127_v51 = vld [vmem:[#allocation2 + $0x238] sm:$0xff] }
  0x5b   :  { %1255 = vmatpush1.bf16.msra.mxu0 %v1254_v31  ;;  %v1340_v31 = vpack.c.bf16 %v101_v26, %v93_v25  ;;  %v118_v48 = vld [vmem:[#allocation2 + $0x1f0] sm:$0xff]  ;;  %v135_v52 = vld [vmem:[#allocation2 + $0x278] sm:$0xff]  ;;  %v141_v60 = vld [vmem:[#allocation2 + $0x2a8] sm:$0xff] }
  0x5c   :  { %1319 = vmatpush1.bf16.msra.mxu1 %v1318_v32  ;;  %1257 = vmatprep.subr.bf16.mxu0 %v1256_v33  ;;  %v92_v32 = vld [vmem:[#allocation2 + $0x120] sm:$0xff]  ;;  %v1412_v58 = vpack.c.bf16 %v135_v52, %v127_v51  ;;  %v134_v59 = vld [vmem:[#allocation2 + $0x270] sm:$0xff]  ;;  %v143_v62 = vld [vmem:[#allocation2 + $0x2b8] sm:$0xff] }
  0x5d   :  { %1321 = vmatprep.subr.bf16.mxu1 %v1320_v37  ;;  %v100_v33 = vld [vmem:[#allocation2 + $0x160] sm:$0xff]  ;;  %v109_v37 = vld [vmem:[#allocation2 + $0x1a8] sm:$0xff]  ;;  %v151_v63 = vld [vmem:[#allocation2 + $0x2f8] sm:$0xff] }
  0x5e   :  { %v1342_v41 = vpack.c.bf16 %v100_v33, %v92_v32  ;;  %v1416_v6 = vpack.c.bf16 %v151_v63, %v143_v62  ;;  %v150_v7 = vld [vmem:[#allocation2 + $0x2f0] sm:$0xff]  ;;  %v157_v8 = vld [vmem:[#allocation2 + $0x328] sm:$0xff]  ;;  %v159_v10 = vld [vmem:[#allocation2 + $0x338] sm:$0xff] }
  0x5f   :  { %1259 = vmatpush1.bf16.msra.mxu0 %v1258_v43  ;;  %v1344_v43 = vpack.c.bf16 %v117_v38, %v109_v37  ;;  %v167_v11 = vld [vmem:[#allocation2 + $0x378] sm:$0xff]  ;;  %v166_v21 = vld [vmem:[#allocation2 + $0x370] sm:$0xff]  ;;  %v173_v22 = vld [vmem:[#allocation2 + $0x3a8] sm:$0xff] }
  0x60   :  { %1323 = vmatpush1.bf16.msra.mxu1 %v1322_v44  ;;  %1261 = vmatprep.subr.bf16.mxu0 %v1260_v45  ;;  %v108_v44 = vld [vmem:[#allocation2 + $0x1a0] sm:$0xff]  ;;  %v1420_v20 = vpack.c.bf16 %v167_v11, %v159_v10  ;;  %v175_v24 = vld [vmem:[#allocation2 + $0x3b8] sm:$0xff]  ;;  %v182_v33 = vld [vmem:[#allocation2 + $0x3f0] sm:$0xff] }
  0x61   :  { %1325 = vmatprep.subr.bf16.mxu1 %v1324_v49  ;;  %v116_v45 = vld [vmem:[#allocation2 + $0x1e0] sm:$0xff]  ;;  %v125_v49 = vld [vmem:[#allocation2 + $0x228] sm:$0xff]  ;;  %v183_v25 = vld [vmem:[#allocation2 + $0x3f8] sm:$0xff] }
  0x62   :  { %v1346_v53 = vpack.c.bf16 %v116_v45, %v108_v44  ;;  %v1348_v54 = vpack.c.bf16 %v133_v50, %v125_v49  ;;  %v1424_v32 = vpack.c.bf16 %v183_v25, %v175_v24  ;;  %v189_v34 = vld [vmem:[#allocation2 + $0x428] sm:$0xff]  ;;  %v191_v36 = vld [vmem:[#allocation2 + $0x438] sm:$0xff]  ;;  %v198_v45 = vld [vmem:[#allocation2 + $0x470] sm:$0xff] }
  0x63   :  { %1263 = vmatpush1.bf16.msra.mxu0 %v1262_v55  ;;  %v124_v55 = vld [vmem:[#allocation2 + $0x220] sm:$0xff]  ;;  %v199_v37 = vld [vmem:[#allocation2 + $0x478] sm:$0xff] }
  0x64   :  { %1327 = vmatpush1.bf16.msra.mxu1 %v1326_v56  ;;  %1265 = vmatprep.subr.bf16.mxu0 %v1264_v57  ;;  %v132_v56 = vld [vmem:[#allocation2 + $0x260] sm:$0xff]  ;;  %v126_v57 = vld [vmem:[#allocation2 + $0x230] sm:$0xff]  ;;  %v1428_v44 = vpack.c.bf16 %v199_v37, %v191_v36  ;;  %v215_v49 = vld [vmem:[#allocation2 + $0x4f8] sm:$0xff] }
  0x65   :  { %1329 = vmatprep.subr.bf16.mxu1 %v1328_v61  ;;  %v149_v61 = vld [vmem:[#allocation2 + $0x2e8] sm:$0xff]  ;;  %v1350_v0 = vpack.c.bf16 %v132_v56, %v124_v55  ;;  %v1414_v1 = vpack.c.bf16 %v134_v59, %v126_v57  ;;  %v214_v56 = vld [vmem:[#allocation2 + $0x4f0] sm:$0xff]  ;;  %v223_v59 = vld [vmem:[#allocation2 + $0x538] sm:$0xff] }
  0x66   :  { %v1352_v2 = vpack.c.bf16 %v149_v61, %v141_v60  ;;  %v221_v57 = vld [vmem:[#allocation2 + $0x528] sm:$0xff]  ;;  %v231_v60 = vld [vmem:[#allocation2 + $0x578] sm:$0xff] }
  0x67   :  { %1267 = vmatpush1.bf16.msra.mxu0 %v1266_v3  ;;  %v140_v3 = vld [vmem:[#allocation2 + $0x2a0] sm:$0xff] }
  0x68   :  { %1331 = vmatpush1.bf16.msra.mxu1 %v1330_v4  ;;  %1333 = vmatprep.subr.bf16.mxu0 %v1332_v5  ;;  %v148_v4 = vld [vmem:[#allocation2 + $0x2e0] sm:$0xff]  ;;  %v142_v5 = vld [vmem:[#allocation2 + $0x2b0] sm:$0xff] }
  0x69   :  { %1397 = vmatprep.subr.bf16.mxu1 %v1396_v9  ;;  %v165_v9 = vld [vmem:[#allocation2 + $0x368] sm:$0xff]  ;;  %v1354_v12 = vpack.c.bf16 %v148_v4, %v140_v3  ;;  %v1418_v13 = vpack.c.bf16 %v150_v7, %v142_v5  ;;  %v1436_v3 = vpack.c.bf16 %v231_v60, %v223_v59  ;;  %v230_v4 = vld [vmem:[#allocation2 + $0x570] sm:$0xff]  ;;  %v239_v7 = vld [vmem:[#allocation2 + $0x5b8] sm:$0xff] }
  0x6a   :  { %419 = vmatmul.mubr.f32.vlgmr.msra.gmra.mrb[0].mxu0 %v1792_v15  ;;  %v1356_v14 = vpack.c.bf16 %v165_v9, %v157_v8  ;;  %v237_v5 = vld [vmem:[#allocation2 + $0x5a8] sm:$0xff]  ;;  %v247_v8 = vld [vmem:[#allocation2 + $0x5f8] sm:$0xff] }
  0x6b   :  { %490 = vmatmul.mubr.f32.vlgmr.msra.gmra.mrb[0].mxu1 %v1792_v15  ;;  %1335 = vmatpush1.bf16.msra.mxu0 %v1334_v17  ;;  %v156_v17 = vld [vmem:[#allocation2 + $0x320] sm:$0xff] }
  0x6c   :  { %1399 = vmatpush1.bf16.msra.mxu1 %v1398_v18  ;;  %1337 = vmatprep.subr.bf16.mxu0 %v1336_v19  ;;  %v164_v18 = vld [vmem:[#allocation2 + $0x360] sm:$0xff]  ;;  %v158_v19 = vld [vmem:[#allocation2 + $0x330] sm:$0xff] }
  0x6d   :  { %1401 = vmatprep.subr.bf16.mxu1 %v1400_v23  ;;  %560 = vmatprep.mubr.f32.mxu0 %v1785_v16  ;;  %v181_v23 = vld [vmem:[#allocation2 + $0x3e8] sm:$0xff]  ;;  %v1358_v26 = vpack.c.bf16 %v164_v18, %v156_v17  ;;  %v1422_v27 = vpack.c.bf16 %v166_v21, %v158_v19  ;;  %v1440_v17 = vpack.c.bf16 %v247_v8, %v239_v7  ;;  %v246_v18 = vld [vmem:[#allocation2 + $0x5f0] sm:$0xff]  ;;  %v255_v21 = vld [vmem:[#allocation2 + $0x638] sm:$0xff] }
  0x6e   :  { %631 = vmatprep.mubr.f32.mxu1 %v1785_v16  ;;  %v1410_v16 = vpack.c.bf16 %v118_v48, %v110_v46  ;;  %v1360_v28 = vpack.c.bf16 %v181_v23, %v173_v22  ;;  %v205_v46 = vld [vmem:[#allocation2 + $0x4a8] sm:$0xff]  ;;  %v207_v48 = vld [vmem:[#allocation2 + $0x4b8] sm:$0xff] }
  0x6f   :  { %1339 = vmatpush1.bf16.msra.mxu0 %v1338_v29  ;;  %v172_v29 = vld [vmem:[#allocation2 + $0x3a0] sm:$0xff]  ;;  %v1432_v55 = vpack.c.bf16 %v215_v49, %v207_v48  ;;  %v253_v19 = vld [vmem:[#allocation2 + $0x628] sm:$0xff]  ;;  %v263_v22 = vld [vmem:[#allocation2 + $0x678] sm:$0xff] }
  0x70   :  { %1403 = vmatpush1.bf16.msra.mxu1 %v1402_v30  ;;  %1341 = vmatprep.subr.bf16.mxu0 %v1340_v31  ;;  %v180_v30 = vld [vmem:[#allocation2 + $0x3e0] sm:$0xff]  ;;  %v174_v31 = vld [vmem:[#allocation2 + $0x3b0] sm:$0xff]  ;;  %v655_v8 = vld [vmem:[%s2151_s3 + $0x18] sm:$0xff] }
  0x71   :  { %1405 = vmatprep.subr.bf16.mxu1 %v1404_v35  ;;  %v197_v35 = vld [vmem:[#allocation2 + $0x468] sm:$0xff]  ;;  %v1362_v38 = vpack.c.bf16 %v180_v30, %v172_v29  ;;  %v1426_v39 = vpack.c.bf16 %v182_v33, %v174_v31  ;;  %v1444_v29 = vpack.c.bf16 %v263_v22, %v255_v21  ;;  %v262_v30 = vld [vmem:[#allocation2 + $0x670] sm:$0xff]  ;;  %v271_v33 = vld [vmem:[#allocation2 + $0x6b8] sm:$0xff] }
  0x72   :  { %v1364_v40 = vpack.c.bf16 %v197_v35, %v189_v34  ;;  %v269_v31 = vld [vmem:[#allocation2 + $0x6a8] sm:$0xff]  ;;  %v279_v34 = vld [vmem:[#allocation2 + $0x6f8] sm:$0xff] }
  0x73   :  { %1343 = vmatpush1.bf16.msra.mxu0 %v1342_v41  ;;  %v188_v41 = vld [vmem:[#allocation2 + $0x420] sm:$0xff]  ;;  %v667_v21 = vld [vmem:[%s2151_s3 + $0x78] sm:$0xff] }
  0x74   :  { %1407 = vmatpush1.bf16.msra.mxu1 %v1406_v42  ;;  %1345 = vmatprep.subr.bf16.mxu0 %v1344_v43  ;;  %v196_v42 = vld [vmem:[#allocation2 + $0x460] sm:$0xff]  ;;  %v190_v43 = vld [vmem:[#allocation2 + $0x430] sm:$0xff]  ;;  %v671_v22 = vld [vmem:[%s2151_s3 + $0x98] sm:$0xff] }
  0x75   :  { %1409 = vmatprep.subr.bf16.mxu1 %v1408_v47  ;;  %v213_v47 = vld [vmem:[#allocation2 + $0x4e8] sm:$0xff]  ;;  %v1366_v50 = vpack.c.bf16 %v196_v42, %v188_v41  ;;  %v1430_v51 = vpack.c.bf16 %v198_v45, %v190_v43  ;;  %v1448_v41 = vpack.c.bf16 %v279_v34, %v271_v33  ;;  %v278_v42 = vld [vmem:[#allocation2 + $0x6f0] sm:$0xff]  ;;  %v287_v45 = vld [vmem:[#allocation2 + $0x738] sm:$0xff] }
  0x76   :  { %v1368_v52 = vpack.c.bf16 %v213_v47, %v205_v46  ;;  %v285_v43 = vld [vmem:[#allocation2 + $0x728] sm:$0xff]  ;;  %v295_v46 = vld [vmem:[#allocation2 + $0x778] sm:$0xff] }
  0x77   :  { %1347 = vmatpush1.bf16.msra.mxu0 %v1346_v53  ;;  %v204_v53 = vld [vmem:[#allocation2 + $0x4a0] sm:$0xff]  ;;  %v679_v33 = vld [vmem:[%s2151_s3 + $0xd8] sm:$0xff] }
  0x78   :  { %1411 = vmatpush1.bf16.msra.mxu1 %v1410_v16  ;;  %1349 = vmatprep.subr.bf16.mxu0 %v1348_v54  ;;  %v212_v16 = vld [vmem:[#allocation2 + $0x4e0] sm:$0xff]  ;;  %v206_v54 = vld [vmem:[#allocation2 + $0x4b0] sm:$0xff]  ;;  %v683_v34 = vld [vmem:[%s2151_s3 + $0xf8] sm:$0xff] }
  0x79   :  { %1413 = vmatprep.subr.bf16.mxu1 %v1412_v58  ;;  %v229_v58 = vld [vmem:[#allocation2 + $0x568] sm:$0xff]  ;;  %v1370_v61 = vpack.c.bf16 %v212_v16, %v204_v53  ;;  %v1434_v62 = vpack.c.bf16 %v214_v56, %v206_v54  ;;  %v1452_v53 = vpack.c.bf16 %v295_v46, %v287_v45  ;;  %v294_v16 = vld [vmem:[#allocation2 + $0x770] sm:$0xff]  ;;  %v303_v56 = vld [vmem:[#allocation2 + $0x7b8] sm:$0xff] }
  0x7a   :  { %v1372_v63 = vpack.c.bf16 %v229_v58, %v221_v57  ;;  %v301_v54 = vld [vmem:[#allocation2 + $0x7a8] sm:$0xff]  ;;  %v311_v57 = vld [vmem:[#allocation2 + $0x7f8] sm:$0xff] }
  0x7b   :  { %1351 = vmatpush1.bf16.msra.mxu0 %v1350_v0  ;;  %v220_v0 = vld [vmem:[#allocation2 + $0x520] sm:$0xff]  ;;  %v691_v45 = vld [vmem:[%s2151_s3 + $0x138] sm:$0xff] }
  0x7c   :  { %1415 = vmatpush1.bf16.msra.mxu1 %v1414_v1  ;;  %1353 = vmatprep.subr.bf16.mxu0 %v1352_v2  ;;  %v228_v1 = vld [vmem:[#allocation2 + $0x560] sm:$0xff]  ;;  %v222_v2 = vld [vmem:[#allocation2 + $0x530] sm:$0xff]  ;;  %v695_v46 = vld [vmem:[%s2151_s3 + $0x158] sm:$0xff] }
  0x7d   :  { %1417 = vmatprep.subr.bf16.mxu1 %v1416_v6  ;;  %v245_v6 = vld [vmem:[#allocation2 + $0x5e8] sm:$0xff]  ;;  %v1374_v9 = vpack.c.bf16 %v228_v1, %v220_v0  ;;  %v1438_v10 = vpack.c.bf16 %v230_v4, %v222_v2  ;;  %v302_v0 = vld [vmem:[#allocation2 + $0x7b0] sm:$0xff] }
  0x7e   :  { %v1376_v11 = vpack.c.bf16 %v245_v6, %v237_v5  ;;  %v310_v1 = vld [vmem:[#allocation2 + $0x7f0] sm:$0xff]  ;;  %v653_v4 = vld [vmem:[%s2151_s3 + $0x8] sm:$0xff]  ;;  %v656_v5 = vld [vmem:[%s2151_s3 + $0x20] sm:$0xff] }
  0x7f   :  { %1355 = vmatpush1.bf16.msra.mxu0 %v1354_v12  ;;  %v236_v12 = vld [vmem:[#allocation2 + $0x5a0] sm:$0xff]  ;;  %v1460_v7 = vpack.c.bf16 %v656_v5, %v653_v4  ;;  %v715_v4 = vld [vmem:[%s2151_s3 + $0x1f8] sm:$0xff] }
  0x80   :  { %1419 = vmatpush1.bf16.msra.mxu1 %v1418_v13  ;;  %1357 = vmatprep.subr.bf16.mxu0 %v1356_v14  ;;  %v244_v13 = vld [vmem:[#allocation2 + $0x5e0] sm:$0xff]  ;;  %v238_v14 = vld [vmem:[#allocation2 + $0x5b0] sm:$0xff]  ;;  %v719_v5 = vld [vmem:[%s2151_s3 + $0x218] sm:$0xff] }
  0x81   :  { %1421 = vmatprep.subr.bf16.mxu1 %v1420_v20  ;;  %v261_v20 = vld [vmem:[#allocation2 + $0x668] sm:$0xff]  ;;  %v1378_v23 = vpack.c.bf16 %v244_v13, %v236_v12  ;;  %v1442_v24 = vpack.c.bf16 %v246_v18, %v238_v14  ;;  %v652_v6 = vld [vmem:[%s2151_s3] sm:$0xff]  ;;  %v658_v12 = vld [vmem:[%s2151_s3 + $0x30] sm:$0xff] }
  0x82   :  { %v1380_v25 = vpack.c.bf16 %v261_v20, %v253_v19  ;;  %v661_v13 = vld [vmem:[%s2151_s3 + $0x48] sm:$0xff]  ;;  %v664_v20 = vld [vmem:[%s2151_s3 + $0x60] sm:$0xff] }
  0x83   :  { %1359 = vmatpush1.bf16.msra.mxu0 %v1358_v26  ;;  %v252_v26 = vld [vmem:[#allocation2 + $0x620] sm:$0xff]  ;;  %v665_v14 = vld [vmem:[%s2151_s3 + $0x68] sm:$0xff]  ;;  %v1466_v18 = vpack.c.bf16 %v661_v13, %v658_v12 }
  0x84   :  { %1423 = vmatpush1.bf16.msra.mxu1 %v1422_v27  ;;  %1361 = vmatprep.subr.bf16.mxu0 %v1360_v28  ;;  %v260_v27 = vld [vmem:[#allocation2 + $0x660] sm:$0xff]  ;;  %v254_v28 = vld [vmem:[#allocation2 + $0x630] sm:$0xff] }
  0x85   :  { %1425 = vmatprep.subr.bf16.mxu1 %v1424_v32  ;;  %v277_v32 = vld [vmem:[#allocation2 + $0x6e8] sm:$0xff]  ;;  %v1382_v35 = vpack.c.bf16 %v260_v27, %v252_v26  ;;  %v1446_v36 = vpack.c.bf16 %v262_v30, %v254_v28  ;;  %v670_v26 = vld [vmem:[%s2151_s3 + $0x90] sm:$0xff] }
  0x86   :  { %v1384_v37 = vpack.c.bf16 %v277_v32, %v269_v31  ;;  %v673_v27 = vld [vmem:[%s2151_s3 + $0xa8] sm:$0xff]  ;;  %v676_v32 = vld [vmem:[%s2151_s3 + $0xc0] sm:$0xff] }
  0x87   :  { %1363 = vmatpush1.bf16.msra.mxu0 %v1362_v38  ;;  %v268_v38 = vld [vmem:[#allocation2 + $0x6a0] sm:$0xff]  ;;  %v677_v28 = vld [vmem:[%s2151_s3 + $0xc8] sm:$0xff]  ;;  %v1474_v30 = vpack.c.bf16 %v673_v27, %v670_v26 }
  0x88   :  { %1427 = vmatpush1.bf16.msra.mxu1 %v1426_v39  ;;  %1365 = vmatprep.subr.bf16.mxu0 %v1364_v40  ;;  %v276_v39 = vld [vmem:[#allocation2 + $0x6e0] sm:$0xff]  ;;  %v270_v40 = vld [vmem:[#allocation2 + $0x6b0] sm:$0xff] }
  0x89   :  { %1429 = vmatprep.subr.bf16.mxu1 %v1428_v44  ;;  %v293_v44 = vld [vmem:[#allocation2 + $0x768] sm:$0xff]  ;;  %v1386_v47 = vpack.c.bf16 %v276_v39, %v268_v38  ;;  %v1450_v48 = vpack.c.bf16 %v278_v42, %v270_v40  ;;  %v682_v38 = vld [vmem:[%s2151_s3 + $0xf0] sm:$0xff]  ;;  %v740_v26 = vld [vmem:[%s2151_s3 + $0x2c0] sm:$0xff] }
  0x8a   :  { %v1388_v49 = vpack.c.bf16 %v293_v44, %v285_v43  ;;  %v685_v39 = vld [vmem:[%s2151_s3 + $0x108] sm:$0xff]  ;;  %v688_v44 = vld [vmem:[%s2151_s3 + $0x120] sm:$0xff] }
  0x8b   :  { %1367 = vmatpush1.bf16.msra.mxu0 %v1366_v50  ;;  %v284_v50 = vld [vmem:[#allocation2 + $0x720] sm:$0xff]  ;;  %v689_v40 = vld [vmem:[%s2151_s3 + $0x128] sm:$0xff]  ;;  %v1482_v42 = vpack.c.bf16 %v685_v39, %v682_v38 }
  0x8c   :  { %1431 = vmatpush1.bf16.msra.mxu1 %v1430_v51  ;;  %1369 = vmatprep.subr.bf16.mxu0 %v1368_v52  ;;  %v292_v51 = vld [vmem:[#allocation2 + $0x760] sm:$0xff]  ;;  %v286_v52 = vld [vmem:[#allocation2 + $0x730] sm:$0xff]  ;;  %v705_v38 = vld [vmem:[%s2151_s3 + $0x1a8] sm:$0xff] }
  0x8d   :  { %1433 = vmatprep.subr.bf16.mxu1 %v1432_v55  ;;  %v309_v55 = vld [vmem:[#allocation2 + $0x7e8] sm:$0xff]  ;;  %v1390_v58 = vpack.c.bf16 %v292_v51, %v284_v50  ;;  %v1454_v59 = vpack.c.bf16 %v294_v16, %v286_v52  ;;  %v694_v50 = vld [vmem:[%s2151_s3 + $0x150] sm:$0xff] }
  0x8e   :  { %v1392_v60 = vpack.c.bf16 %v309_v55, %v301_v54  ;;  %v697_v51 = vld [vmem:[%s2151_s3 + $0x168] sm:$0xff]  ;;  %v700_v55 = vld [vmem:[%s2151_s3 + $0x180] sm:$0xff] }
  0x8f   :  { %1371 = vmatpush1.bf16.msra.mxu0 %v1370_v61  ;;  %v300_v61 = vld [vmem:[#allocation2 + $0x7a0] sm:$0xff]  ;;  %v701_v52 = vld [vmem:[%s2151_s3 + $0x188] sm:$0xff]  ;;  %v1490_v16 = vpack.c.bf16 %v697_v51, %v694_v50  ;;  %v915_v50 = vld [vmem:[#allocation4 + $0x30] sm:$0xff] }
  0x90   :  { %1435 = vmatpush1.bf16.msra.mxu1 %v1434_v62  ;;  %1373 = vmatprep.subr.bf16.mxu0 %v1372_v63  ;;  %v308_v62 = vld [vmem:[#allocation2 + $0x7e0] sm:$0xff]  ;;  %v1456_v63 = vpack.c.bf16 %v311_v57, %v303_v56  ;;  %v703_v56 = vld [vmem:[%s2151_s3 + $0x198] sm:$0xff]  ;;  %v918_v51 = vld [vmem:[#allocation4 + $0x48] sm:$0xff] }
  0x91   :  { %1437 = vmatprep.subr.bf16.mxu1 %v1436_v3  ;;  %v1394_v2 = vpack.c.bf16 %v308_v62, %v300_v61  ;;  %v1458_v3 = vpack.c.bf16 %v310_v1, %v302_v0  ;;  %v707_v57 = vld [vmem:[%s2151_s3 + $0x1b8] sm:$0xff]  ;;  %v706_v61 = vld [vmem:[%s2151_s3 + $0x1b0] sm:$0xff]  ;;  %v709_v62 = vld [vmem:[%s2151_s3 + $0x1c8] sm:$0xff] }
  0x92   :  { %v716_v0 = vld [vmem:[%s2151_s3 + $0x200] sm:$0xff]  ;;  %v1498_v1 = vpack.c.bf16 %v709_v62, %v706_v61 }
  0x93   :  { %1375 = vmatpush1.bf16.msra.mxu0 %v1374_v9  ;;  %v662_v9 = vld [vmem:[%s2151_s3 + $0x50] sm:$0xff]  ;;  %v921_v62 = vld [vmem:[#allocation4 + $0x60] sm:$0xff] }
  0x94   :  { %1439 = vmatpush1.bf16.msra.mxu1 %v1438_v10  ;;  %1377 = vmatprep.subr.bf16.mxu0 %v1376_v11  ;;  %v1462_v10 = vpack.c.bf16 %v655_v8, %v652_v6  ;;  %v722_v6 = vld [vmem:[%s2151_s3 + $0x230] sm:$0xff] }
  0x95   :  { %1441 = vmatprep.subr.bf16.mxu1 %v1440_v17  ;;  %v668_v17 = vld [vmem:[%s2151_s3 + $0x80] sm:$0xff]  ;;  %v1504_v8 = vpack.c.bf16 %v722_v6, %v719_v5  ;;  %v927_v6 = vld [vmem:[#allocation4 + $0x90] sm:$0xff] }
  0x96   :  { %v1468_v19 = vpack.c.bf16 %v668_v17, %v665_v14  ;;  %v724_v14 = vld [vmem:[%s2151_s3 + $0x240] sm:$0xff]  ;;  %v727_v17 = vld [vmem:[%s2151_s3 + $0x258] sm:$0xff] }
  0x97   :  { %1379 = vmatpush1.bf16.msra.mxu0 %v1378_v23  ;;  %v674_v23 = vld [vmem:[%s2151_s3 + $0xb0] sm:$0xff]  ;;  %v925_v5 = vld [vmem:[#allocation4 + $0x80] sm:$0xff] }
  0x98   :  { %1443 = vmatpush1.bf16.msra.mxu1 %v1442_v24  ;;  %1381 = vmatprep.subr.bf16.mxu0 %v1380_v25  ;;  %v1470_v24 = vpack.c.bf16 %v667_v21, %v664_v20  ;;  %v1472_v25 = vpack.c.bf16 %v674_v23, %v671_v22  ;;  %v1510_v20 = vpack.c.bf16 %v727_v17, %v724_v14  ;;  %v730_v22 = vld [vmem:[%s2151_s3 + $0x270] sm:$0xff]  ;;  %v733_v23 = vld [vmem:[%s2151_s3 + $0x288] sm:$0xff]  ;;  %v929_v17 = vld [vmem:[#allocation4 + $0xa0] sm:$0xff] }
  0x99   :  { %1445 = vmatprep.subr.bf16.mxu1 %v1444_v29  ;;  %v680_v29 = vld [vmem:[%s2151_s3 + $0xe0] sm:$0xff] }
  0x9a   :  { %v1476_v31 = vpack.c.bf16 %v680_v29, %v677_v28  ;;  %v736_v28 = vld [vmem:[%s2151_s3 + $0x2a0] sm:$0xff]  ;;  %v739_v29 = vld [vmem:[%s2151_s3 + $0x2b8] sm:$0xff] }
  0x9b   :  { %1383 = vmatpush1.bf16.msra.mxu0 %v1382_v35  ;;  %v686_v35 = vld [vmem:[%s2151_s3 + $0x110] sm:$0xff] }
  0x9c   :  { %1447 = vmatpush1.bf16.msra.mxu1 %v1446_v36  ;;  %1385 = vmatprep.subr.bf16.mxu0 %v1384_v37  ;;  %v1478_v36 = vpack.c.bf16 %v679_v33, %v676_v32  ;;  %v1480_v37 = vpack.c.bf16 %v686_v35, %v683_v34  ;;  %v746_v32 = vld [vmem:[%s2151_s3 + $0x2f0] sm:$0xff]  ;;  %v745_v35 = vld [vmem:[%s2151_s3 + $0x2e8] sm:$0xff] }
  0x9d   :  { %1449 = vmatprep.subr.bf16.mxu1 %v1448_v41  ;;  %v692_v41 = vld [vmem:[%s2151_s3 + $0x140] sm:$0xff]  ;;  %v742_v34 = vld [vmem:[%s2151_s3 + $0x2d0] sm:$0xff] }
  0x9e   :  { %v1484_v43 = vpack.c.bf16 %v692_v41, %v689_v40  ;;  %v910_v40 = vld [vmem:[#allocation4 + $0x8] sm:$0xff]  ;;  %v912_v41 = vld [vmem:[#allocation4 + $0x18] sm:$0xff] }
  0x9f   :  { %1387 = vmatpush1.bf16.msra.mxu0 %v1386_v47  ;;  %v698_v47 = vld [vmem:[%s2151_s3 + $0x170] sm:$0xff] }
  0xa0   :  { %1451 = vmatpush1.bf16.msra.mxu1 %v1450_v48  ;;  %1389 = vmatprep.subr.bf16.mxu0 %v1388_v49  ;;  %v1486_v48 = vpack.c.bf16 %v691_v45, %v688_v44  ;;  %v1488_v49 = vpack.c.bf16 %v698_v47, %v695_v46  ;;  %v911_v44 = vld [vmem:[#allocation4 + $0x10] sm:$0xff]  ;;  %v914_v45 = vld [vmem:[#allocation4 + $0x28] sm:$0xff]  ;;  %v916_v46 = vld [vmem:[#allocation4 + $0x38] sm:$0xff] }
  0xa1   :  { %1453 = vmatprep.subr.bf16.mxu1 %v1452_v53  ;;  %v704_v53 = vld [vmem:[%s2151_s3 + $0x1a0] sm:$0xff] }
  0xa2   :  { %v1492_v54 = vpack.c.bf16 %v704_v53, %v701_v52  ;;  %v920_v52 = vld [vmem:[#allocation4 + $0x58] sm:$0xff] }
  0xa3   :  { %1391 = vmatpush1.bf16.msra.mxu0 %v1390_v58  ;;  %v710_v58 = vld [vmem:[%s2151_s3 + $0x1d0] sm:$0xff] }
  0xa4   :  { %1455 = vmatpush1.bf16.msra.mxu1 %v1454_v59  ;;  %1393 = vmatprep.subr.bf16.mxu0 %v1392_v60  ;;  %v1494_v59 = vpack.c.bf16 %v703_v56, %v700_v55  ;;  %v1496_v60 = vpack.c.bf16 %v710_v58, %v707_v57  ;;  %v917_v55 = vld [vmem:[#allocation4 + $0x40] sm:$0xff]  ;;  %v919_v56 = vld [vmem:[#allocation4 + $0x50] sm:$0xff]  ;;  %v922_v57 = vld [vmem:[#allocation4 + $0x68] sm:$0xff] }
  0xa5   :  { %1457 = vmatprep.subr.bf16.mxu1 %v1456_v63  ;;  %v713_v63 = vld [vmem:[%s2151_s3 + $0x1e8] sm:$0xff]  ;;  %v924_v58 = vld [vmem:[#allocation4 + $0x78] sm:$0xff] }
  0xa6   :  { %v1568_v61 = vpack.c.bf16 %v924_v58, %v922_v57  ;;  %v945_v57 = vld [vmem:[#allocation4 + $0x120] sm:$0xff]  ;;  %v947_v58 = vld [vmem:[#allocation4 + $0x130] sm:$0xff] }
  0xa7   :  { %1395 = vmatpush1.bf16.msra.mxu0 %v1394_v2  ;;  %v1500_v2 = vpack.c.bf16 %v716_v0, %v713_v63  ;;  %v923_v63 = vld [vmem:[#allocation4 + $0x70] sm:$0xff]  ;;  %v926_v0 = vld [vmem:[#allocation4 + $0x88] sm:$0xff] }
  0xa8   :  { %1459 = vmatpush1.bf16.msra.mxu1 %v1458_v3  ;;  %1461 = vmatprep.subr.bf16.mxu0 %v1460_v7  ;;  %v712_v3 = vld [vmem:[%s2151_s3 + $0x1e0] sm:$0xff] }
  0xa9   :  { %v1502_v7 = vpack.c.bf16 %v715_v4, %v712_v3 }
  0xaa   :  { %561 = vmatmul.mubr.f32.vlgmr.msra.gmra.mrb[2].mxu0 %v1792_v15 }
  0xab   :  { %632 = vmatmul.mubr.f32.vlgmr.msra.gmra.mrb[2].mxu1 %v1792_v15  ;;  %v659_v15 = vld [vmem:[%s2151_s3 + $0x38] sm:$0xff]  ;;  %1463 = vmatpush1.bf16.msra.mxu0 %v1462_v10  ;;  %v725_v10 = vld [vmem:[%s2151_s3 + $0x248] sm:$0xff] }
  0xac   :  { %v1464_v11 = vpack.c.bf16 %v662_v9, %v659_v15  ;;  %v718_v15 = vld [vmem:[%s2151_s3 + $0x210] sm:$0xff]  ;;  %v721_v9 = vld [vmem:[%s2151_s3 + $0x228] sm:$0xff] }
  0xad   :  { %v1506_v12 = vpack.c.bf16 %v721_v9, %v718_v15  ;;  %v930_v9 = vld [vmem:[#allocation4 + $0xa8] sm:$0xff] }
  0xae   :  { %1465 = vmatprep.subr.bf16.mxu0 %v1464_v11  ;;  %v728_v11 = vld [vmem:[%s2151_s3 + $0x260] sm:$0xff] }
  0xaf   :  { %1467 = vmatpush1.bf16.msra.mxu0 %v1466_v18  ;;  %v1508_v13 = vpack.c.bf16 %v728_v11, %v725_v10  ;;  %v731_v18 = vld [vmem:[%s2151_s3 + $0x278] sm:$0xff] }
  0xb0   :  { %1469 = vmatprep.subr.bf16.mxu0 %v1468_v19  ;;  %v734_v19 = vld [vmem:[%s2151_s3 + $0x290] sm:$0xff]  ;;  %v932_v10 = vld [vmem:[#allocation4 + $0xb8] sm:$0xff] }
  0xb1   :  { %v1512_v21 = vpack.c.bf16 %v734_v19, %v731_v18  ;;  %v1576_v14 = vpack.c.bf16 %v932_v10, %v930_v9  ;;  %v931_v18 = vld [vmem:[#allocation4 + $0xb0] sm:$0xff]  ;;  %v953_v9 = vld [vmem:[#allocation4 + $0x160] sm:$0xff] }
  0xb2   :  { %v955_v10 = vld [vmem:[#allocation4 + $0x170] sm:$0xff] }
  0xb3   :  { %1471 = vmatpush1.bf16.msra.mxu0 %v1470_v24  ;;  %v1514_v24 = vpack.c.bf16 %v733_v23, %v730_v22  ;;  %v936_v22 = vld [vmem:[#allocation4 + $0xd8] sm:$0xff] }
  0xb4   :  { %1473 = vmatprep.subr.bf16.mxu0 %v1472_v25  ;;  %v737_v25 = vld [vmem:[%s2151_s3 + $0x2a8] sm:$0xff] }
  0xb5   :  { %v1516_v27 = vpack.c.bf16 %v740_v26, %v737_v25  ;;  %v1578_v25 = vpack.c.bf16 %v931_v18, %v929_v17  ;;  %v957_v17 = vld [vmem:[#allocation4 + $0x180] sm:$0xff]  ;;  %v959_v18 = vld [vmem:[#allocation4 + $0x190] sm:$0xff] }
  0xb7   :  { %1475 = vmatpush1.bf16.msra.mxu0 %v1474_v30  ;;  %v1518_v30 = vpack.c.bf16 %v739_v29, %v736_v28 }
  0xb8   :  { %1477 = vmatprep.subr.bf16.mxu0 %v1476_v31  ;;  %v743_v31 = vld [vmem:[%s2151_s3 + $0x2d8] sm:$0xff] }
  0xb9   :  { %v1520_v33 = vpack.c.bf16 %v746_v32, %v743_v31  ;;  %v935_v31 = vld [vmem:[#allocation4 + $0xd0] sm:$0xff] }
  0xbb   :  { %1479 = vmatpush1.bf16.msra.mxu0 %v1478_v36  ;;  %v1522_v36 = vpack.c.bf16 %v745_v35, %v742_v34  ;;  %v938_v35 = vld [vmem:[#allocation4 + $0xe8] sm:$0xff] }
  0xbc   :  { %1481 = vmatprep.subr.bf16.mxu0 %v1480_v37  ;;  %v702_v37 = vld [vmem:[%s2151_s3 + $0x190] sm:$0xff] }
  0xbd   :  { %v1524_v39 = vpack.c.bf16 %v705_v38, %v702_v37 }
  0xbf   :  { %1483 = vmatpush1.bf16.msra.mxu0 %v1482_v42  ;;  %v909_v42 = vld [vmem:[#allocation4] sm:$0xff] }
  0xc0   :  { %1485 = vmatprep.subr.bf16.mxu0 %v1484_v43  ;;  %v1556_v43 = vpack.c.bf16 %v912_v41, %v910_v40  ;;  %v1558_v47 = vpack.c.bf16 %v911_v44, %v909_v42  ;;  %v937_v44 = vld [vmem:[#allocation4 + $0xe0] sm:$0xff] }
  0xc2   :  { %1557 = vmatprep.subr.bf16.mxu1 %v1556_v43 }
  0xc3   :  { %1487 = vmatpush1.bf16.msra.mxu0 %v1486_v48  ;;  %v1560_v48 = vpack.c.bf16 %v916_v46, %v914_v45  ;;  %1559 = vmatpush1.bf16.msra.mxu1 %v1558_v47  ;;  %v939_v45 = vld [vmem:[#allocation4 + $0xf0] sm:$0xff]  ;;  %v942_v47 = vld [vmem:[#allocation4 + $0x108] sm:$0xff] }
  0xc4   :  { %1489 = vmatprep.subr.bf16.mxu0 %v1488_v49  ;;  %v913_v49 = vld [vmem:[#allocation4 + $0x20] sm:$0xff] }
  0xc5   :  { %v1562_v53 = vpack.c.bf16 %v915_v50, %v913_v49  ;;  %1561 = vmatprep.subr.bf16.mxu1 %v1560_v48  ;;  %v944_v48 = vld [vmem:[#allocation4 + $0x118] sm:$0xff]  ;;  %v1586_v50 = vpack.c.bf16 %v939_v45, %v937_v44 }
  0xc7   :  { %1491 = vmatpush1.bf16.msra.mxu0 %v1490_v16  ;;  %v314_v16 = vlaneseq  ;;  %1563 = vmatpush1.bf16.msra.mxu1 %v1562_v53  ;;  %v943_v53 = vld [vmem:[#allocation4 + $0x110] sm:$0xff] }
  0xc8   :  { %1493 = vmatprep.subr.bf16.mxu0 %v1492_v54  ;;  %v1564_v54 = vpack.c.bf16 %v920_v52, %v918_v51  ;;  %v1588_v51 = vpack.c.bf16 %v944_v48, %v942_v47  ;;  %v941_v52 = vld [vmem:[#allocation4 + $0x100] sm:$0xff] }
  0xca   :  { %1565 = vmatprep.subr.bf16.mxu1 %v1564_v54  ;;  %v948_v54 = vld [vmem:[#allocation4 + $0x138] sm:$0xff] }
  0xcb   :  { %1495 = vmatpush1.bf16.msra.mxu0 %v1494_v59  ;;  %v1566_v59 = vpack.c.bf16 %v919_v56, %v917_v55  ;;  %v1590_v55 = vpack.c.bf16 %v943_v53, %v941_v52  ;;  %v654_v52 = vld [vmem:[%s2151_s3 + $0x10] sm:$0xff] }
  0xcc   :  { %1497 = vmatprep.subr.bf16.mxu0 %v1496_v60  ;;  %v1998_v60 = vshrl.u32 %v314_v16, 7  ;;  %v946_v16 = vld [vmem:[#allocation4 + $0x128] sm:$0xff] }
  0xcd   :  { %1567 = vmatpush1.bf16.msra.mxu1 %v1566_v59  ;;  %v1592_v56 = vpack.c.bf16 %v948_v54, %v946_v16  ;;  %v950_v59 = vld [vmem:[#allocation4 + $0x148] sm:$0xff]  ;;  %v708_v16 = vld [vmem:[%s2151_s3 + $0x1c0] sm:$0xff]  ;;  %v711_v54 = vld [vmem:[%s2151_s3 + $0x1d8] sm:$0xff] }
  0xce   :  { %v2001_v3 = vsub.s32 0, %v1998_v60  ;;  %1569 = vmatprep.subr.bf16.mxu1 %v1568_v61  ;;  %v2010_v15 = vsub.s32 1, %v1998_v60  ;;  %v328_v11 = vsub.s32 3, %v1998_v60  ;;  %v952_v61 = vld [vmem:[#allocation4 + $0x158] sm:$0xff] }
  0xcf   :  { %1499 = vmatpush1.bf16.msra.mxu0 %v1498_v1  ;;  %v928_v1 = vld [vmem:[#allocation4 + $0x98] sm:$0xff] }
  0xd0   :  { %1501 = vmatprep.subr.bf16.mxu0 %v1500_v2  ;;  %v1570_v2 = vpack.c.bf16 %v923_v63, %v921_v62  ;;  %v1572_v4 = vpack.c.bf16 %v928_v1, %v926_v0  ;;  %v1594_v62 = vpack.c.bf16 %v947_v58, %v945_v57  ;;  %v1596_v63 = vpack.c.bf16 %v952_v61, %v950_v59  ;;  %v949_v0 = vld [vmem:[#allocation4 + $0x140] sm:$0xff]  ;;  %v951_v1 = vld [vmem:[#allocation4 + $0x150] sm:$0xff]  ;;  %v663_v61 = vld [vmem:[%s2151_s3 + $0x58] sm:$0xff] }
  0xd1   :  { %v1528_v58 = vpack.c.bf16 %v711_v54, %v708_v16  ;;  %v660_v59 = vld [vmem:[%s2151_s3 + $0x40] sm:$0xff] }
  0xd2   :  { %1571 = vmatpush1.bf16.msra.mxu1 %v1570_v2  ;;  %v954_v2 = vld [vmem:[#allocation4 + $0x168] sm:$0xff] }
  0xd3   :  { %1503 = vmatpush1.bf16.msra.mxu0 %v1502_v7  ;;  %v2006_v7 = vld [vmem:[%s2150_s2] sm:$0xff]  ;;  %1573 = vmatprep.subr.bf16.mxu1 %v1572_v4  ;;  %v956_v4 = vld [vmem:[#allocation4 + $0x178] sm:$0xff] }
  0xd4   :  { %1505 = vmatprep.subr.bf16.mxu0 %v1504_v8  ;;  %v324_v8 = vsub.s32 2, %v1998_v60  ;;  %v329_v23 = vrot.slane %v2006_v7, %v328_v11  ;;  %v958_v11 = vld [vmem:[#allocation4 + $0x188] sm:$0xff] }
  0xd6   :  { %v325_v19 = vrot.slane %v2006_v7, %v324_v8 }
  0xd7   :  { %1507 = vmatpush1.bf16.msra.mxu0 %v1506_v12  ;;  %v1574_v12 = vpack.c.bf16 %v927_v6, %v925_v5  ;;  %v1598_v5 = vpack.c.bf16 %v951_v1, %v949_v0  ;;  %v1600_v6 = vpack.c.bf16 %v956_v4, %v954_v2  ;;  %v666_v0 = vld [vmem:[%s2151_s3 + $0x70] sm:$0xff]  ;;  %v669_v1 = vld [vmem:[%s2151_s3 + $0x88] sm:$0xff]  ;;  %v720_v2 = vld [vmem:[%s2151_s3 + $0x220] sm:$0xff] }
  0xd8   :  { %1509 = vmatprep.subr.bf16.mxu0 %v1508_v13  ;;  %v317_v13 = vrot.slane %v2006_v7, %v2001_v3  ;;  %v723_v4 = vld [vmem:[%s2151_s3 + $0x238] sm:$0xff] }
  0xd9   :  { %1575 = vmatpush1.bf16.msra.mxu1 %v1574_v12  ;;  %v960_v12 = vld [vmem:[#allocation4 + $0x198] sm:$0xff] }
  0xda   :  { %1577 = vmatprep.subr.bf16.mxu1 %v1576_v14  ;;  %v1604_v14 = vpack.c.bf16 %v960_v12, %v958_v11  ;;  %v726_v11 = vld [vmem:[%s2151_s3 + $0x250] sm:$0xff]  ;;  %v729_v12 = vld [vmem:[%s2151_s3 + $0x268] sm:$0xff] }
  0xdb   :  { %1511 = vmatpush1.bf16.msra.mxu0 %v1510_v20  ;;  %v321_v20 = vrot.slane %v2006_v7, %v2010_v15 }
  0xdc   :  { %1513 = vmatprep.subr.bf16.mxu0 %v1512_v21  ;;  %v934_v21 = vld [vmem:[#allocation4 + $0xc8] sm:$0xff] }
  0xdd   :  { %v1580_v29 = vpack.c.bf16 %v936_v22, %v934_v21  ;;  %1579 = vmatpush1.bf16.msra.mxu1 %v1578_v25  ;;  %v1606_v21 = vpack.c.bf16 %v959_v18, %v957_v17  ;;  %v966_v25 = vld [vmem:[#allocation4 + $0x1c8] sm:$0xff]  ;;  %v678_v17 = vld [vmem:[%s2151_s3 + $0xd0] sm:$0xff] }
  0xde   :  { %v681_v18 = vld [vmem:[%s2151_s3 + $0xe8] sm:$0xff] }
  0xdf   :  { %1515 = vmatpush1.bf16.msra.mxu0 %v1514_v24  ;;  %1581 = vmatprep.subr.bf16.mxu1 %v1580_v29  ;;  %v332_v29 = vsub.s32 4, %v1998_v60 }
  0xe0   :  { %1517 = vmatprep.subr.bf16.mxu0 %v1516_v27 }
  0xe3   :  { %1519 = vmatpush1.bf16.msra.mxu0 %v1518_v30  ;;  %v933_v30 = vld [vmem:[#allocation4 + $0xc0] sm:$0xff] }
  0xe4   :  { %1521 = vmatprep.subr.bf16.mxu0 %v1520_v33  ;;  %v1582_v41 = vpack.c.bf16 %v935_v31, %v933_v30  ;;  %v340_v30 = vsub.s32 6, %v1998_v60  ;;  %v336_v31 = vsub.s32 5, %v1998_v60 }
  0xe6   :  { %1583 = vmatpush1.bf16.msra.mxu1 %v1582_v41 }
  0xe7   :  { %1523 = vmatpush1.bf16.msra.mxu0 %v1522_v36  ;;  %v940_v36 = vld [vmem:[#allocation4 + $0xf8] sm:$0xff] }
  0xe8   :  { %1525 = vmatprep.subr.bf16.mxu0 %v1524_v39  ;;  %v1584_v43 = vpack.c.bf16 %v940_v36, %v938_v35  ;;  %v337_v35 = vrot.slane %v2006_v7, %v336_v31  ;;  %v744_v31 = vld [vmem:[%s2151_s3 + $0x2e0] sm:$0xff] }
  0xea   :  { %1585 = vmatprep.subr.bf16.mxu1 %v1584_v43 }
  0xeb   :  { %1587 = vmatpush1.bf16.msra.mxu1 %v1586_v50 }
  0xec   :  { %1589 = vmatprep.subr.bf16.mxu1 %v1588_v51 }
  0xef   :  { %1591 = vmatpush1.bf16.msra.mxu1 %v1590_v55 }
  0xf0   :  { %1593 = vmatprep.subr.bf16.mxu1 %v1592_v56 }
  0xf3   :  { %1595 = vmatpush1.bf16.msra.mxu1 %v1594_v62  ;;  %v714_v62 = vld [vmem:[%s2151_s3 + $0x1f0] sm:$0xff] }
  0xf4   :  { %1597 = vmatprep.subr.bf16.mxu1 %v1596_v63 }
  0xf7   :  { %1599 = vmatpush1.bf16.msra.mxu1 %v1598_v5  ;;  %v1534_v5 = vpack.c.bf16 %v669_v1, %v666_v0  ;;  %v977_v0 = vld [vmem:[#allocation4 + $0x220] sm:$0xff]  ;;  %v979_v1 = vld [vmem:[#allocation4 + $0x230] sm:$0xff] }
  0xf8   :  { %1601 = vmatprep.subr.bf16.mxu1 %v1600_v6  ;;  %v1536_v6 = vpack.c.bf16 %v723_v4, %v720_v2  ;;  %v982_v2 = vld [vmem:[#allocation4 + $0x248] sm:$0xff]  ;;  %v984_v4 = vld [vmem:[#allocation4 + $0x258] sm:$0xff] }
 0x13d   :  { %v420_v24 = vpop.f32.mrb[0].mxu0 }
 0x13e   :  { %v421_v26 = vadd.f32 %v420_v24, %v317_v13  ;;  %v491_v27 = vpop.f32.mrb[0].mxu1  ;;  %v422_v28 = vpop.f32.mrb[1].mxu0  ;;  %v1602_v13 = vpack.c.bf16 %v955_v10, %v953_v9  ;;  %v963_v24 = vld [vmem:[#allocation4 + $0x1b0] sm:$0xff]  ;;  %v672_v9 = vld [vmem:[%s2151_s3 + $0xa0] sm:$0xff]  ;;  %v675_v10 = vld [vmem:[%s2151_s3 + $0xb8] sm:$0xff] }
 0x13f   :  { %v492_v32 = vadd.f32 %v491_v27, %v325_v19  ;;  %v423_v33 = vadd.f32 %v422_v28, %v321_v20  ;;  %v493_v34 = vpop.f32.mrb[1].mxu1  ;;  %v962_v19 = vld [vmem:[#allocation4 + $0x1a8] sm:$0xff]  ;;  %v964_v20 = vld [vmem:[#allocation4 + $0x1b8] sm:$0xff] }
 0x140   :  { %v638_v37 = vmax.f32 %v421_v26, 0.0  ;;  %v494_v38 = vadd.f32 %v493_v34, %v329_v23  ;;  %1603 = vmatpush1.bf16.msra.mxu1 %v1602_v13  ;;  %v1608_v22 = vpack.c.bf16 %v964_v20, %v962_v19  ;;  %v961_v23 = vld [vmem:[#allocation4 + $0x1a0] sm:$0xff]  ;;  %v968_v26 = vld [vmem:[#allocation4 + $0x1d8] sm:$0xff]  ;;  %v341_v34 = vrot.slane %v2006_v7, %v340_v30  ;;  %v693_v30 = vld [vmem:[%s2151_s3 + $0x148] sm:$0xff] }
 0x141   :  { %v640_v39 = vmax.f32 %v492_v32, 0.0  ;;  %v639_v40 = vmax.f32 %v423_v33, 0.0  ;;  %1605 = vmatprep.subr.bf16.mxu1 %v1604_v14  ;;  %v1610_v27 = vpack.c.bf16 %v963_v24, %v961_v23  ;;  %v1612_v28 = vpack.c.bf16 %v968_v26, %v966_v25  ;;  %v732_v19 = vld [vmem:[%s2151_s3 + $0x280] sm:$0xff]  ;;  %v735_v20 = vld [vmem:[%s2151_s3 + $0x298] sm:$0xff]  ;;  %v738_v25 = vld [vmem:[%s2151_s3 + $0x2b0] sm:$0xff] }
 0x142   :  { %v641_v42 = vmax.f32 %v494_v38, 0.0  ;;  %v344_v32 = vsub.s32 7, %v1998_v60  ;;  %v333_v33 = vrot.slane %v2006_v7, %v332_v29  ;;  %v1538_v13 = vpack.c.bf16 %v675_v10, %v672_v9  ;;  %v684_v23 = vld [vmem:[%s2151_s3 + $0x100] sm:$0xff]  ;;  %v687_v24 = vld [vmem:[%s2151_s3 + $0x118] sm:$0xff]  ;;  %v741_v26 = vld [vmem:[%s2151_s3 + $0x2c8] sm:$0xff] }
 0x143   :  { %v2021_v46 = vmax.f32 %v638_v37, %v640_v39  ;;  %v1540_v14 = vpack.c.bf16 %v729_v12, %v726_v11  ;;  %v690_v29 = vld [vmem:[%s2151_s3 + $0x130] sm:$0xff]  ;;  %v1628_v9 = vpack.c.bf16 %v984_v4, %v982_v2  ;;  %v981_v10 = vld [vmem:[#allocation4 + $0x240] sm:$0xff]  ;;  %v986_v12 = vld [vmem:[#allocation4 + $0x268] sm:$0xff] }
 0x144   :  { %v2023_v49 = vmax.f32 %v639_v40, %v641_v42  ;;  %1607 = vmatpush1.bf16.msra.mxu1 %v1606_v21  ;;  %v345_v36 = vrot.slane %v2006_v7, %v344_v32  ;;  %v657_v7 = vld [vmem:[%s2151_s3 + $0x28] sm:$0xff]  ;;  %v1542_v21 = vpack.c.bf16 %v681_v18, %v678_v17  ;;  %v747_v32 = vld [vmem:[%s2151_s3 + $0x2f8] sm:$0xff]  ;;  %v983_v11 = vld [vmem:[#allocation4 + $0x250] sm:$0xff] }
 0x145   :  { %1609 = vmatprep.subr.bf16.mxu1 %v1608_v22  ;;  %v1526_v57 = vpack.c.bf16 %v657_v7, %v654_v52  ;;  %v1544_v22 = vpack.c.bf16 %v735_v20, %v732_v19  ;;  %v2128_v52 = vld [vmem:[%s2152_s4] sm:$0x7]  ;;  %v987_v19 = vld [vmem:[#allocation4 + $0x270] sm:$0xff]  ;;  %v990_v20 = vld [vmem:[#allocation4 + $0x288] sm:$0xff] }
 0x146   :  { %v753_v7 = vrot.slane %v2128_v52, %v2001_v3  ;;  %v985_v18 = vld [vmem:[#allocation4 + $0x260] sm:$0xff] }
 0x148   :  { %1611 = vmatpush1.bf16.msra.mxu1 %v1610_v27  ;;  %v1546_v27 = vpack.c.bf16 %v687_v24, %v684_v23  ;;  %v989_v24 = vld [vmem:[#allocation4 + $0x280] sm:$0xff] }
 0x149   :  { %1613 = vmatprep.subr.bf16.mxu1 %v1612_v28  ;;  %v1548_v28 = vpack.c.bf16 %v741_v26, %v738_v25  ;;  %v991_v25 = vld [vmem:[#allocation4 + $0x290] sm:$0xff]  ;;  %v994_v26 = vld [vmem:[#allocation4 + $0x2a8] sm:$0xff] }
 0x17d   :  { %v562_v37 = vpop.f32.mrb[2].mxu0 }
 0x17e   :  { %v563_v38 = vadd.f32 %v562_v37, %v333_v33  ;;  %v633_v39 = vpop.f32.mrb[2].mxu1  ;;  %v564_v40 = vpop.f32.mrb[3].mxu0  ;;  %v1550_v33 = vpack.c.bf16 %v693_v30, %v690_v29  ;;  %v993_v30 = vld [vmem:[#allocation4 + $0x2a0] sm:$0xff] }
 0x17f   :  { %v634_v41 = vadd.f32 %v633_v39, %v341_v34  ;;  %v565_v42 = vadd.f32 %v564_v40, %v337_v35  ;;  %v635_v43 = vpop.f32.mrb[3].mxu1  ;;  %v1552_v34 = vpack.c.bf16 %v747_v32, %v744_v31  ;;  %v696_v35 = vld [vmem:[%s2151_s3 + $0x160] sm:$0xff]  ;;  %v967_v39 = vld [vmem:[#allocation4 + $0x1d0] sm:$0xff]  ;;  %v998_v32 = vld [vmem:[#allocation4 + $0x2c8] sm:$0xff] }
 0x180   :  { %v642_v44 = vmax.f32 %v563_v38, 0.0  ;;  %v636_v45 = vadd.f32 %v635_v43, %v345_v36  ;;  %v699_v36 = vld [vmem:[%s2151_s3 + $0x178] sm:$0xff]  ;;  %v965_v38 = vld [vmem:[#allocation4 + $0x1c0] sm:$0xff]  ;;  %v995_v31 = vld [vmem:[#allocation4 + $0x2b0] sm:$0xff] }
 0x181   :  { %v644_v47 = vmax.f32 %v634_v41, 0.0  ;;  %v643_v48 = vmax.f32 %v565_v42, 0.0  ;;  %v1554_v37 = vpack.c.bf16 %v699_v36, %v696_v35  ;;  %v1614_v40 = vpack.c.bf16 %v967_v39, %v965_v38  ;;  %v970_v41 = vld [vmem:[#allocation4 + $0x1e8] sm:$0xff]  ;;  %v972_v42 = vld [vmem:[#allocation4 + $0x1f8] sm:$0xff]  ;;  %v997_v36 = vld [vmem:[#allocation4 + $0x2c0] sm:$0xff] }
 0x182   :  { %v645_v50 = vmax.f32 %v636_v45, 0.0  ;;  %v1616_v43 = vpack.c.bf16 %v972_v42, %v970_v41  ;;  %v971_v45 = vld [vmem:[#allocation4 + $0x1f0] sm:$0xff]  ;;  %v1002_v38 = vld [vmem:[#allocation4 + $0x2e8] sm:$0xff]  ;;  %v1004_v39 = vld [vmem:[#allocation4 + $0x2f8] sm:$0xff] }
 0x183   :  { %v648_v51 = vmax.f32 %v642_v44, %v644_v47  ;;  %1615 = vmatpush1.bf16.msra.mxu1 %v1614_v40  ;;  %v969_v44 = vld [vmem:[#allocation4 + $0x1e0] sm:$0xff]  ;;  %v1648_v41 = vpack.c.bf16 %v1004_v39, %v1002_v38 }
 0x184   :  { %v649_v53 = vmax.f32 %v643_v48, %v645_v50  ;;  %v1618_v47 = vpack.c.bf16 %v971_v45, %v969_v44  ;;  %1617 = vmatprep.subr.bf16.mxu1 %v1616_v43  ;;  %v974_v48 = vld [vmem:[#allocation4 + $0x208] sm:$0xff]  ;;  %v976_v50 = vld [vmem:[#allocation4 + $0x218] sm:$0xff]  ;;  %v1001_v42 = vld [vmem:[#allocation4 + $0x2e0] sm:$0xff]  ;;  %v761_v45 = vrot.slane %v2128_v52, %v324_v8 }
 0x185   :  { %v650_v55 = vmax.f32 %v2021_v46, %v648_v51  ;;  %v717_v46 = vld [vmem:[%s2151_s3 + $0x208] sm:$0xff]  ;;  %v1620_v51 = vpack.c.bf16 %v976_v50, %v974_v48  ;;  %v1003_v43 = vld [vmem:[#allocation4 + $0x2f0] sm:$0xff] }
 0x186   :  { %v651_v56 = vmax.f32 %v2023_v49, %v649_v53  ;;  %v1530_v49 = vpack.c.bf16 %v663_v61, %v660_v59  ;;  %v1532_v63 = vpack.c.bf16 %v717_v46, %v714_v62  ;;  %v757_v53 = vrot.slane %v2128_v52, %v2010_v15  ;;  %v978_v59 = vld [vmem:[#allocation4 + $0x228] sm:$0xff]  ;;  %v980_v61 = vld [vmem:[#allocation4 + $0x238] sm:$0xff] }
 0x187   :  { %1619 = vmatpush1.bf16.msra.mxu1 %v1618_v47  ;;  %v1650_v47 = vpack.c.bf16 %v1003_v43, %v1001_v42 }
 0x188   :  { %829 = vmatprep.mubr.f32.mxu0 %v651_v56  ;;  %1621 = vmatprep.subr.bf16.mxu1 %v1620_v51 }
 0x189   :  { %830 = vmatmul.mubr.f32.vlgmr.msra.gmra.mrb[4].mxu0 %v650_v55 }
 0x18a   :  { %1527 = vmatpush3.bf16.msra.mxu0 %v1526_v57  ;;  %900 = vmatprep.mubr.f32.mxu0 %v651_v56  ;;  %v973_v56 = vld [vmem:[#allocation4 + $0x200] sm:$0xff]  ;;  %v975_v57 = vld [vmem:[#allocation4 + $0x210] sm:$0xff] }
 0x18b   :  { %1529 = vmatprep.subr.bf16.mxu0 %v1528_v58  ;;  %v1622_v46 = vpack.c.bf16 %v975_v57, %v973_v56 }
 0x18e   :  { %1531 = vmatpush3.bf16.msra.mxu0 %v1530_v49 }
 0x18f   :  { %1533 = vmatprep.subr.bf16.mxu0 %v1532_v63  ;;  %v1624_v63 = vpack.c.bf16 %v980_v61, %v978_v59 }
 0x192   :  { %1535 = vmatpush3.bf16.msra.mxu0 %v1534_v5  ;;  %v1626_v5 = vpack.c.bf16 %v979_v1, %v977_v0 }
 0x193   :  { %1537 = vmatprep.subr.bf16.mxu0 %v1536_v6  ;;  %v1717_v6 = vmov 0.0  }
 0x196   :  { %1539 = vmatpush3.bf16.msra.mxu0 %v1538_v13  ;;  %v988_v13 = vld [vmem:[#allocation4 + $0x278] sm:$0xff] }
 0x197   :  { %1541 = vmatprep.subr.bf16.mxu0 %v1540_v14  ;;  %v1630_v14 = vpack.c.bf16 %v983_v11, %v981_v10  ;;  %v1632_v17 = vpack.c.bf16 %v988_v13, %v986_v12 }
 0x19a   :  { %1543 = vmatpush3.bf16.msra.mxu0 %v1542_v21  ;;  %v992_v21 = vld [vmem:[#allocation4 + $0x298] sm:$0xff] }
 0x19b   :  { %1545 = vmatprep.subr.bf16.mxu0 %v1544_v22  ;;  %v1634_v22 = vpack.c.bf16 %v987_v19, %v985_v18  ;;  %v1636_v23 = vpack.c.bf16 %v992_v21, %v990_v20 }
 0x19e   :  { %1547 = vmatpush3.bf16.msra.mxu0 %v1546_v27  ;;  %v996_v27 = vld [vmem:[#allocation4 + $0x2b8] sm:$0xff] }
 0x19f   :  { %1549 = vmatprep.subr.bf16.mxu0 %v1548_v28  ;;  %v1638_v28 = vpack.c.bf16 %v991_v25, %v989_v24  ;;  %v1640_v29 = vpack.c.bf16 %v996_v27, %v994_v26 }
 0x1a2   :  { %1551 = vmatpush3.bf16.msra.mxu0 %v1550_v33  ;;  %v1000_v33 = vld [vmem:[#allocation4 + $0x2d8] sm:$0xff] }
 0x1a3   :  { %1553 = vmatprep.subr.bf16.mxu0 %v1552_v34  ;;  %v1642_v34 = vpack.c.bf16 %v995_v31, %v993_v30  ;;  %v1644_v35 = vpack.c.bf16 %v1000_v33, %v998_v32 }
 0x1a6   :  { %1555 = vmatpush3.bf16.msra.mxu0 %v1554_v37  ;;  %v999_v37 = vld [vmem:[#allocation4 + $0x2d0] sm:$0xff] }
 0x1a7   :  { %v1646_v40 = vpack.c.bf16 %v999_v37, %v997_v36 }
 0x1a9   :  { %901 = vmatmul.mubr.f32.vlgmr.msra.gmra.mrb[6].mxu0 %v650_v55 }
 0x25c   :  { %v831_v16 = vpop.f32.mrb[4].mxu0 }
 0x25d   :  { %v832_v54 = vadd.f32 %v831_v16, %v753_v7  ;;  %v833_v55 = vpop.f32.mrb[5].mxu0 }
 0x25e   :  { %v834_v58 = vadd.f32 %v833_v55, %v757_v53  ;;  %v1005_v53 = vld [vmem:[%s2154_s6] sm:$0x3] }
 0x25f   :  { %v906_v49 = vmax.f32 %v832_v54, 0.0  ;;  %v1010_v16 = vrot.slane %v1005_v53, %v2001_v3  ;;  %v1014_v54 = vrot.slane %v1005_v53, %v2010_v15 }
 0x260   :  { %v907_v62 = vmax.f32 %v834_v58, 0.0 }
 0x262   :  { %1081 = vmatprep.mubr.f32.mxu1 %v907_v62 }
 0x263   :  { %1082 = vmatmul.mubr.f32.vlgmr.msra.gmra.mrb[4].mxu1 %v906_v49 }
 0x264   :  { %1623 = vmatpush1.bf16.msra.mxu1 %v1622_v46  ;;  %1152 = vmatprep.mubr.f32.mxu1 %v1717_v6 }
 0x265   :  { %1625 = vmatprep.subr.bf16.mxu1 %v1624_v63 }
 0x268   :  { %1627 = vmatpush1.bf16.msra.mxu1 %v1626_v5 }
 0x269   :  { %1629 = vmatprep.subr.bf16.mxu1 %v1628_v9 }
 0x26c   :  { %1631 = vmatpush1.bf16.msra.mxu1 %v1630_v14 }
 0x26d   :  { %1633 = vmatprep.subr.bf16.mxu1 %v1632_v17 }
 0x270   :  { %1635 = vmatpush1.bf16.msra.mxu1 %v1634_v22 }
 0x271   :  { %1637 = vmatprep.subr.bf16.mxu1 %v1636_v23 }
 0x274   :  { %1639 = vmatpush1.bf16.msra.mxu1 %v1638_v28 }
 0x275   :  { %1641 = vmatprep.subr.bf16.mxu1 %v1640_v29 }
 0x278   :  { %1643 = vmatpush1.bf16.msra.mxu1 %v1642_v34 }
 0x279   :  { %1645 = vmatprep.subr.bf16.mxu1 %v1644_v35 }
 0x27c   :  { %v1201_v44 = vpop.f32.mrb[6].mxu0  ;;  %1647 = vmatpush1.bf16.msra.mxu1 %v1646_v40 }
 0x27d   :  { %v1202_v48 = vpop.f32.mrb[7].mxu0  ;;  %1649 = vmatprep.subr.bf16.mxu1 %v1648_v41 }
 0x27e   :  { %v1203_v50 = vadd.f32 %v1202_v48, %v1201_v44 }
 0x280   :  { %v903_v51 = vadd.f32 %v1203_v50, %v761_v45  ;;  %1651 = vmatpush1.bf16.msra.mxu1 %v1650_v47 }
 0x282   :  { %v908_v7 = vmax.f32 %v903_v51, 0.0 }
 0x284   :  { %1153 = vmatmul.mubr.f32.vlgmr.msra.gmra.mrb[4].mxu1 %v908_v7 }
 0x357   :  { %v1154_v60 = vpop.f32.mrb[4].mxu1 }
 0x358   :  { %v1652_v55 = vadd.f32 %v1154_v60, %v1010_v16  ;;  %v1156_v8 = vpop.f32.mrb[5].mxu1 }
 0x359   :  { %v1653_v52 = vadd.f32 %v1156_v8, %v1014_v54 }
 0x35a   :  { %v1159_v56 = vmax.f32 %v1652_v55, 0.0 }
 0x35b   :  { %v1160_v57 = vmax.f32 %v1653_v52, 0.0 }
 0x35c   :  { %1161 = vst [vmem:[%s2155_s7] sm:$0xff] %v1159_v56 }
 0x35d   :  { %1162 = vst [vmem:[%s2155_s7 + $0x8] sm:$0xff] %v1160_v57 }
 0x35e   :  { %1167 = vsyncpa [#allocation3], 1 }
 0x35f   :  { %1168 = vsyncpa [#allocation5], 1 }

</bundles_post_ra>
